<compile_context>
chip_gen: v6e
topology: v6e:2x2x1
jax: 0.10.0
libtpu: 0.0.40
codegen_flags: <defaults>
</compile_context>

<pallas_src>
import jax
import jax.numpy as jnp
from jax.experimental import pallas as pl
from jax.experimental.pallas import tpu as pltpu

_VMEM = pl.BlockSpec(memory_space=pltpu.MemorySpace.VMEM)


# ----------------------------------------------------------------------------
# Fused Pallas kernel
# ----------------------------------------------------------------------------
def _gat_layer(x_bf, mask, w_bf, att_bf, bias, *, heads, out_ch, apply_elu):
    """One GATConv layer (concat=True, negative_slope=0.2).

    x_bf   : [N, F_in]   bf16 node features
    mask   : [N, N]      bool edge mask (adj > 0, self-loops included)
    w_bf   : [F_in, H*C] bf16 weight
    att_bf : [H*C, 2H]   bf16; cols 0..H-1 -> per-head src score, H..2H-1 -> dst
    bias   : [1, H*C]    f32
    """
    f32, bf16 = jnp.float32, jnp.bfloat16
    # Feature transform (MXU, bf16 operands, f32 accumulate): [N, H*C]
    h = jnp.dot(x_bf, w_bf, preferred_element_type=f32)
    hb = h.astype(bf16)
    # Per-node, per-head src/dst attention scores in one small matmul: [N, 2H]
    a = jnp.dot(hb, att_bf, preferred_element_type=f32)
    a_src_t = jnp.transpose(a[:, :heads])                      # [H, N], once/layer
    neg = jnp.float32(-1e30)
    outs = []
    for hd in range(heads):
        # e[i, j] = leaky_relu(a_dst[i, hd] + a_src[j, hd], 0.2)  (VPU broadcast-add)
        e = a[:, heads + hd:heads + hd + 1] + a_src_t[hd:hd + 1, :]      # [N, N]
        e = jnp.where(e > 0, e, 0.2 * e)
        # Mask BEFORE the row max so non-edge scores cannot dominate the shift.
        e = jnp.where(mask, e, neg)
        m = jnp.max(e, axis=1, keepdims=True)                            # [N, 1]
        p = jnp.exp(e - m)                      # masked entries underflow to 0
        denom = jnp.sum(p, axis=1, keepdims=True)            # [N, 1]  (XLU reduce)
        # Per-head aggregation on a lane slice of h (ONE matmul per head).
        agg = jnp.dot(p.astype(bf16), hb[:, hd * out_ch:(hd + 1) * out_ch],
                      preferred_element_type=f32)                         # [N, C]
        # Self-loops guarantee denom >= 1; exact reciprocal on the tiny [N,1].
        outs.append(agg / denom)
    o = jnp.concatenate(outs, axis=1) + bias                              # [N, H*C]
    if apply_elu:
        o = jnp.where(o > 0, o, jnp.exp(o) - 1.0)
    return o


def make_fused_gat_kernel(heads: int, out_chs):
    c1, c2, c3 = out_chs

    def kernel(x_ref, adj_ref, pool_ref,
               w1_ref, a1_ref, b1_ref,
               w2_ref, a2_ref, b2_ref,
               w3_ref, a3_ref, b3_ref,
               wl_ref, bl_ref, out_ref):
        f32, bf16 = jnp.float32, jnp.bfloat16
        # adj ships as bf16 (mask only, never an MXU operand); bool mask reused
        # by every head of every layer.
        mask = adj_ref[...].astype(f32) > 0.5                             # [N, N]

        h = _gat_layer(x_ref[...].astype(bf16), mask, w1_ref[...], a1_ref[...],
                       b1_ref[...], heads=heads, out_ch=c1, apply_elu=True)
        # TODO(synk): F.dropout(p=0.4) between layers is eval-mode identity.
        h = _gat_layer(h.astype(bf16), mask, w2_ref[...], a2_ref[...],
                       b2_ref[...], heads=heads, out_ch=c2, apply_elu=True)
        h = _gat_layer(h.astype(bf16), mask, w3_ref[...], a3_ref[...],
                       b3_ref[...], heads=heads, out_ch=c3, apply_elu=False)

        # Fused epilogue: global mean pool -> ReLU -> Linear(H*C3, 1).
        pooled = jnp.maximum(
            jnp.dot(pool_ref[...], h.astype(bf16), preferred_element_type=f32),
            0.0)                                                          # [G, H*C3]
        out_ref[...] = (jnp.dot(pooled.astype(bf16), wl_ref[...],
                                preferred_element_type=f32) + bl_ref[...])  # [G, 1]

    return kernel


def fused_gat_logits(x, adj, pool_mat, params, *, heads=3):
    (w1, a1, b1), (w2, a2, b2), (w3, a3, b3), (wl, bl) = params
    bf16 = jnp.bfloat16
    out_chs = (w1.shape[1] // heads, w2.shape[1] // heads, w3.shape[1] // heads)
    g = pool_mat.shape[0]
    args = (x, adj.astype(bf16), pool_mat.astype(bf16),
            w1.astype(bf16), a1.astype(bf16), b1,
            w2.astype(bf16), a2.astype(bf16), b2,
            w3.astype(bf16), a3.astype(bf16), b3,
            wl.astype(bf16), bl)
    return pl.pallas_call(
        make_fused_gat_kernel(heads, out_chs),
        out_shape=jax.ShapeDtypeStruct((g, 1), jnp.float32),
        in_specs=[_VMEM] * len(args),
        out_specs=_VMEM,
    )(*args)


# ----------------------------------------------------------------------------
# Plain-JAX glue (loss, double sigmoid) and host-side parameter packing
# ----------------------------------------------------------------------------
def bce_with_logits(logits, targets):
    z, y = logits, targets
    return jnp.mean(jnp.maximum(z, 0.0) - z * y + jnp.log1p(jnp.exp(-jnp.abs(z))))


@jax.jit
def gat_forward(x, adj, pool_mat, y, params):
    logits = fused_gat_logits(x, adj, pool_mat, params)
    loss = bce_with_logits(logits, y.reshape(-1, 1).astype(logits.dtype))
    out = jax.nn.sigmoid(jax.nn.sigmoid(logits))
    return out, loss, logits


def glorot(key, shape):
    fan_in, fan_out = shape[0], shape[-1]
    lim = jnp.sqrt(6.0 / (fan_in + fan_out))
    return jax.random.uniform(key, shape, jnp.float32, -lim, lim)


def build_att_mat(att_src, att_dst):
    """Pack [H, C] src/dst attention vectors into one [H*C, 2H] block matrix."""
    heads, c = att_src.shape
    mat = jnp.zeros((heads * c, 2 * heads), jnp.float32)
    for h in range(heads):
        mat = mat.at[h * c:(h + 1) * c, h].set(att_src[h])
        mat = mat.at[h * c:(h + 1) * c, heads + h].set(att_dst[h])
    return mat


# ----------------------------------------------------------------------------
# Pure-JAX reference (per-head, f32) for a correctness check
# ----------------------------------------------------------------------------
def _gat_layer_ref(x, adj, w, att_src, att_dst, bias, apply_elu):
    h = x @ w
    heads, c = att_src.shape
    outs = []
    for hd in range(heads):
        hh = h[:, hd * c:(hd + 1) * c]
        a_s = hh @ att_src[hd]
        a_d = hh @ att_dst[hd]
        e = a_d[:, None] + a_s[None, :]
        e = jnp.where(e > 0, e, 0.2 * e)
        e = jnp.where(adj > 0.5, e, -jnp.inf)
        att = jax.nn.softmax(e, axis=1)
        outs.append(att @ hh)
    o = jnp.concatenate(outs, axis=1) + bias
    if apply_elu:
        o = jnp.where(o > 0, o, jnp.exp(o) - 1.0)
    return o


def gat_logits_ref(x, adj, pool_mat, raw_params):
    (w1, s1, d1, b1), (w2, s2, d2, b2), (w3, s3, d3, b3), (wl, bl) = raw_params
    h = _gat_layer_ref(x, adj, w1, s1, d1, b1, True)
    h = _gat_layer_ref(h, adj, w2, s2, d2, b2, True)
    h = _gat_layer_ref(h, adj, w3, s3, d3, b3, False)
    pooled = jnp.maximum(pool_mat @ h, 0.0)
    return pooled @ wl + bl


if __name__ == "__main__":
    # n_features=16, hidden_channels=8, heads=3 -> 24 -> 12 -> 6 -> 1
    N, G = 16, 2
    n_features, hidden, heads = 16, 8, 3
    c1, c2, c3 = hidden, hidden // 2, hidden // 4

    key = jax.random.PRNGKey(0)
    keys = jax.random.split(key, 16)

    x = jax.random.normal(keys[0], (N, n_features), jnp.float32)
    y = jnp.array([0.0, 1.0], jnp.float32)             # one label per graph

    # Two graphs of 8 nodes each, ring topology, undirected + self loops.
    adj = jnp.zeros((N, N), jnp.float32)
    for g in range(G):
        base = g * 8
        for i in range(8):
            src, dst = base + i, base + (i + 1) % 8
            adj = adj.at[dst, src].set(1.0)
            adj = adj.at[src, dst].set(1.0)
    adj = adj + jnp.eye(N, dtype=jnp.float32)          # self loops

    pool_mat = jnp.zeros((G, N), jnp.float32)
    pool_mat = pool_mat.at[0, 0:8].set(1.0 / 8.0)
    pool_mat = pool_mat.at[1, 8:16].set(1.0 / 8.0)

    # conv_one: 16 -> 8 x 3 heads
    w1 = glorot(keys[1], (n_features, heads * c1))
    s1, d1 = glorot(keys[2], (heads, c1)), glorot(keys[3], (heads, c1))
    b1 = jnp.zeros((1, heads * c1), jnp.float32)
    # conv_two: 24 -> 4 x 3 heads
    w2 = glorot(keys[4], (heads * c1, heads * c2))
    s2, d2 = glorot(keys[5], (heads, c2)), glorot(keys[6], (heads, c2))
    b2 = jnp.zeros((1, heads * c2), jnp.float32)
    # conv_three: 12 -> 2 x 3 heads
    w3 = glorot(keys[7], (heads * c2, heads * c3))
    s3, d3 = glorot(keys[8], (heads, c3)), glorot(keys[9], (heads, c3))
    b3 = jnp.zeros((1, heads * c3), jnp.float32)
    # linear: 6 -> 1
    wl = glorot(keys[10], (heads * c3, 1))
    bl = jnp.zeros((1, 1), jnp.float32)

    params = ((w1, build_att_mat(s1, d1), b1),
              (w2, build_att_mat(s2, d2), b2),
              (w3, build_att_mat(s3, d3), b3),
              (wl, bl))
    raw_params = ((w1, s1, d1, b1), (w2, s2, d2, b2), (w3, s3, d3, b3), (wl, bl))

    out, loss, logits = gat_forward(x, adj, pool_mat, y, params)
    jax.block_until_ready((out, loss, logits))

    logits_ref = gat_logits_ref(x, adj, pool_mat, raw_params)
    assert out.shape == (G, 1) and bool(jnp.isfinite(loss))
    # bf16 MXU operands (f32 accumulation) -> small drift vs. the all-f32 reference.
    assert bool(jnp.allclose(logits, logits_ref, atol=5e-2, rtol=5e-2))
    print("KERNEL_OK")
</pallas_src>

<mosaic_0001>
module attributes {stable_mosaic.version = 11 : i64} {
  func.func @kernel(%arg0: memref<16x16xf32, #tpu.memory_space<vmem>>, %arg1: memref<16x16xbf16, #tpu.memory_space<vmem>>, %arg2: memref<2x16xbf16, #tpu.memory_space<vmem>>, %arg3: memref<16x24xbf16, #tpu.memory_space<vmem>>, %arg4: memref<24x6xbf16, #tpu.memory_space<vmem>>, %arg5: memref<1x24xf32, #tpu.memory_space<vmem>>, %arg6: memref<24x12xbf16, #tpu.memory_space<vmem>>, %arg7: memref<12x6xbf16, #tpu.memory_space<vmem>>, %arg8: memref<1x12xf32, #tpu.memory_space<vmem>>, %arg9: memref<12x6xbf16, #tpu.memory_space<vmem>>, %arg10: memref<6x6xbf16, #tpu.memory_space<vmem>>, %arg11: memref<1x6xf32, #tpu.memory_space<vmem>>, %arg12: memref<6x1xbf16, #tpu.memory_space<vmem>>, %arg13: memref<1x1xf32, #tpu.memory_space<vmem>>, %arg14: memref<2x1xf32, #tpu.memory_space<vmem>>) attributes {dimension_semantics = [], scalar_prefetch = 0 : i64, scratch_operands = 0 : i64, tpu.core_type = #tpu.core_type<tc>} {
    %c0 = arith.constant 0 : index
    %c0_0 = arith.constant 0 : index
    %0 = vector.load %arg1[%c0, %c0_0] : memref<16x16xbf16, #tpu.memory_space<vmem>>, vector<16x16xbf16>
    %1 = arith.extf %0 : vector<16x16xbf16> to vector<16x16xf32>
    %cst = arith.constant 5.000000e-01 : f32
    %2 = vector.broadcast %cst : f32 to vector<16x16xf32>
    %3 = arith.cmpf ogt, %1, %2 : vector<16x16xf32>
    %c0_1 = arith.constant 0 : index
    %c0_2 = arith.constant 0 : index
    %4 = vector.load %arg0[%c0_1, %c0_2] : memref<16x16xf32, #tpu.memory_space<vmem>>, vector<16x16xf32>
    %5 = arith.truncf %4 : vector<16x16xf32> to vector<16x16xbf16>
    %c0_3 = arith.constant 0 : index
    %c0_4 = arith.constant 0 : index
    %6 = vector.load %arg3[%c0_3, %c0_4] : memref<16x24xbf16, #tpu.memory_space<vmem>>, vector<16x24xbf16>
    %c0_5 = arith.constant 0 : index
    %c0_6 = arith.constant 0 : index
    %7 = vector.load %arg4[%c0_5, %c0_6] : memref<24x6xbf16, #tpu.memory_space<vmem>>, vector<24x6xbf16>
    %c0_7 = arith.constant 0 : index
    %c0_8 = arith.constant 0 : index
    %8 = vector.load %arg5[%c0_7, %c0_8] : memref<1x24xf32, #tpu.memory_space<vmem>>, vector<1x24xf32>
    %cst_9 = arith.constant dense<0.000000e+00> : vector<16x24xf32>
    %9 = tpu.matmul %5, %6, %cst_9 {dimension_numbers = #tpu.dot_dimension_numbers<[1], [0], [0], [1], [0, 0, 1, 1], [], []>} : vector<16x16xbf16>, vector<16x24xbf16>, vector<16x24xf32> -> vector<16x24xf32>
    %10 = arith.truncf %9 : vector<16x24xf32> to vector<16x24xbf16>
    %cst_10 = arith.constant dense<0.000000e+00> : vector<16x6xf32>
    %11 = tpu.matmul %10, %7, %cst_10 {dimension_numbers = #tpu.dot_dimension_numbers<[1], [0], [0], [1], [0, 0, 1, 1], [], []>} : vector<16x24xbf16>, vector<24x6xbf16>, vector<16x6xf32> -> vector<16x6xf32>
    %12 = vector.extract_strided_slice %11 {offsets = [0, 0], sizes = [16, 3], strides = [1, 1]} : vector<16x6xf32> to vector<16x3xf32>
    %13 = tpu.transpose %12, [1, 0] : vector<16x3xf32> -> vector<3x16xf32>
    %14 = vector.extract_strided_slice %11 {offsets = [0, 3], sizes = [16, 1], strides = [1, 1]} : vector<16x6xf32> to vector<16x1xf32>
    %15 = vector.extract_strided_slice %13 {offsets = [0, 0], sizes = [1, 16], strides = [1, 1]} : vector<3x16xf32> to vector<1x16xf32>
    %16 = vector.broadcast %14 : vector<16x1xf32> to vector<16x16xf32>
    %17 = vector.broadcast %15 : vector<1x16xf32> to vector<16x16xf32>
    %18 = arith.addf %16, %17 : vector<16x16xf32>
    %cst_11 = arith.constant 0.000000e+00 : f32
    %19 = vector.broadcast %cst_11 : f32 to vector<16x16xf32>
    %20 = arith.cmpf ogt, %18, %19 : vector<16x16xf32>
    %cst_12 = arith.constant 2.000000e-01 : f32
    %21 = vector.broadcast %cst_12 : f32 to vector<16x16xf32>
    %22 = arith.mulf %21, %18 : vector<16x16xf32>
    %23 = arith.select %20, %18, %22 : vector<16x16xi1>, vector<16x16xf32>
    %cst_13 = arith.constant -1.000000e+30 : f32
    %24 = vector.broadcast %cst_13 : f32 to vector<16x16xf32>
    %25 = arith.select %3, %23, %24 : vector<16x16xi1>, vector<16x16xf32>
    %cst_14 = arith.constant dense<0xFF800000> : vector<16xf32>
    %26 = vector.multi_reduction <maximumf>, %25, %cst_14 [1] : vector<16x16xf32> to vector<16xf32>
    %27 = vector.shape_cast %26 : vector<16xf32> to vector<16x1xf32>
    %28 = vector.broadcast %27 : vector<16x1xf32> to vector<16x16xf32>
    %29 = arith.subf %25, %28 : vector<16x16xf32>
    %30 = math.exp %29 : vector<16x16xf32>
    %cst_15 = arith.constant dense<0.000000e+00> : vector<16xf32>
    %31 = vector.multi_reduction <add>, %30, %cst_15 [1] : vector<16x16xf32> to vector<16xf32>
    %32 = vector.shape_cast %31 : vector<16xf32> to vector<16x1xf32>
    %33 = arith.truncf %30 : vector<16x16xf32> to vector<16x16xbf16>
    %34 = vector.extract_strided_slice %10 {offsets = [0, 0], sizes = [16, 8], strides = [1, 1]} : vector<16x24xbf16> to vector<16x8xbf16>
    %cst_16 = arith.constant dense<0.000000e+00> : vector<16x8xf32>
    %35 = tpu.matmul %33, %34, %cst_16 {dimension_numbers = #tpu.dot_dimension_numbers<[1], [0], [0], [1], [0, 0, 1, 1], [], []>} : vector<16x16xbf16>, vector<16x8xbf16>, vector<16x8xf32> -> vector<16x8xf32>
    %36 = vector.broadcast %32 : vector<16x1xf32> to vector<16x8xf32>
    %37 = arith.divf %35, %36 : vector<16x8xf32>
    %38 = vector.extract_strided_slice %11 {offsets = [0, 4], sizes = [16, 1], strides = [1, 1]} : vector<16x6xf32> to vector<16x1xf32>
    %39 = vector.extract_strided_slice %13 {offsets = [1, 0], sizes = [1, 16], strides = [1, 1]} : vector<3x16xf32> to vector<1x16xf32>
    %40 = vector.broadcast %38 : vector<16x1xf32> to vector<16x16xf32>
    %41 = vector.broadcast %39 : vector<1x16xf32> to vector<16x16xf32>
    %42 = arith.addf %40, %41 : vector<16x16xf32>
    %cst_17 = arith.constant 0.000000e+00 : f32
    %43 = vector.broadcast %cst_17 : f32 to vector<16x16xf32>
    %44 = arith.cmpf ogt, %42, %43 : vector<16x16xf32>
    %cst_18 = arith.constant 2.000000e-01 : f32
    %45 = vector.broadcast %cst_18 : f32 to vector<16x16xf32>
    %46 = arith.mulf %45, %42 : vector<16x16xf32>
    %47 = arith.select %44, %42, %46 : vector<16x16xi1>, vector<16x16xf32>
    %cst_19 = arith.constant -1.000000e+30 : f32
    %48 = vector.broadcast %cst_19 : f32 to vector<16x16xf32>
    %49 = arith.select %3, %47, %48 : vector<16x16xi1>, vector<16x16xf32>
    %cst_20 = arith.constant dense<0xFF800000> : vector<16xf32>
    %50 = vector.multi_reduction <maximumf>, %49, %cst_20 [1] : vector<16x16xf32> to vector<16xf32>
    %51 = vector.shape_cast %50 : vector<16xf32> to vector<16x1xf32>
    %52 = vector.broadcast %51 : vector<16x1xf32> to vector<16x16xf32>
    %53 = arith.subf %49, %52 : vector<16x16xf32>
    %54 = math.exp %53 : vector<16x16xf32>
    %cst_21 = arith.constant dense<0.000000e+00> : vector<16xf32>
    %55 = vector.multi_reduction <add>, %54, %cst_21 [1] : vector<16x16xf32> to vector<16xf32>
    %56 = vector.shape_cast %55 : vector<16xf32> to vector<16x1xf32>
    %57 = arith.truncf %54 : vector<16x16xf32> to vector<16x16xbf16>
    %58 = vector.extract_strided_slice %10 {offsets = [0, 8], sizes = [16, 8], strides = [1, 1]} : vector<16x24xbf16> to vector<16x8xbf16>
    %cst_22 = arith.constant dense<0.000000e+00> : vector<16x8xf32>
    %59 = tpu.matmul %57, %58, %cst_22 {dimension_numbers = #tpu.dot_dimension_numbers<[1], [0], [0], [1], [0, 0, 1, 1], [], []>} : vector<16x16xbf16>, vector<16x8xbf16>, vector<16x8xf32> -> vector<16x8xf32>
    %60 = vector.broadcast %56 : vector<16x1xf32> to vector<16x8xf32>
    %61 = arith.divf %59, %60 : vector<16x8xf32>
    %62 = vector.extract_strided_slice %11 {offsets = [0, 5], sizes = [16, 1], strides = [1, 1]} : vector<16x6xf32> to vector<16x1xf32>
    %63 = vector.extract_strided_slice %13 {offsets = [2, 0], sizes = [1, 16], strides = [1, 1]} : vector<3x16xf32> to vector<1x16xf32>
    %64 = vector.broadcast %62 : vector<16x1xf32> to vector<16x16xf32>
    %65 = vector.broadcast %63 : vector<1x16xf32> to vector<16x16xf32>
    %66 = arith.addf %64, %65 : vector<16x16xf32>
    %cst_23 = arith.constant 0.000000e+00 : f32
    %67 = vector.broadcast %cst_23 : f32 to vector<16x16xf32>
    %68 = arith.cmpf ogt, %66, %67 : vector<16x16xf32>
    %cst_24 = arith.constant 2.000000e-01 : f32
    %69 = vector.broadcast %cst_24 : f32 to vector<16x16xf32>
    %70 = arith.mulf %69, %66 : vector<16x16xf32>
    %71 = arith.select %68, %66, %70 : vector<16x16xi1>, vector<16x16xf32>
    %cst_25 = arith.constant -1.000000e+30 : f32
    %72 = vector.broadcast %cst_25 : f32 to vector<16x16xf32>
    %73 = arith.select %3, %71, %72 : vector<16x16xi1>, vector<16x16xf32>
    %cst_26 = arith.constant dense<0xFF800000> : vector<16xf32>
    %74 = vector.multi_reduction <maximumf>, %73, %cst_26 [1] : vector<16x16xf32> to vector<16xf32>
    %75 = vector.shape_cast %74 : vector<16xf32> to vector<16x1xf32>
    %76 = vector.broadcast %75 : vector<16x1xf32> to vector<16x16xf32>
    %77 = arith.subf %73, %76 : vector<16x16xf32>
    %78 = math.exp %77 : vector<16x16xf32>
    %cst_27 = arith.constant dense<0.000000e+00> : vector<16xf32>
    %79 = vector.multi_reduction <add>, %78, %cst_27 [1] : vector<16x16xf32> to vector<16xf32>
    %80 = vector.shape_cast %79 : vector<16xf32> to vector<16x1xf32>
    %81 = arith.truncf %78 : vector<16x16xf32> to vector<16x16xbf16>
    %82 = vector.extract_strided_slice %10 {offsets = [0, 16], sizes = [16, 8], strides = [1, 1]} : vector<16x24xbf16> to vector<16x8xbf16>
    %cst_28 = arith.constant dense<0.000000e+00> : vector<16x8xf32>
    %83 = tpu.matmul %81, %82, %cst_28 {dimension_numbers = #tpu.dot_dimension_numbers<[1], [0], [0], [1], [0, 0, 1, 1], [], []>} : vector<16x16xbf16>, vector<16x8xbf16>, vector<16x8xf32> -> vector<16x8xf32>
    %84 = vector.broadcast %80 : vector<16x1xf32> to vector<16x8xf32>
    %85 = arith.divf %83, %84 : vector<16x8xf32>
    %86 = tpu.concatenate %37, %61, %85 in 1 : vector<16x8xf32>, vector<16x8xf32>, vector<16x8xf32> -> vector<16x24xf32>
    %87 = vector.broadcast %8 : vector<1x24xf32> to vector<16x24xf32>
    %88 = arith.addf %86, %87 : vector<16x24xf32>
    %cst_29 = arith.constant 0.000000e+00 : f32
    %89 = vector.broadcast %cst_29 : f32 to vector<16x24xf32>
    %90 = arith.cmpf ogt, %88, %89 : vector<16x24xf32>
    %91 = math.exp %88 : vector<16x24xf32>
    %cst_30 = arith.constant 1.000000e+00 : f32
    %92 = vector.broadcast %cst_30 : f32 to vector<16x24xf32>
    %93 = arith.subf %91, %92 : vector<16x24xf32>
    %94 = arith.select %90, %88, %93 : vector<16x24xi1>, vector<16x24xf32>
    %95 = arith.truncf %94 : vector<16x24xf32> to vector<16x24xbf16>
    %c0_31 = arith.constant 0 : index
    %c0_32 = arith.constant 0 : index
    %96 = vector.load %arg6[%c0_31, %c0_32] : memref<24x12xbf16, #tpu.memory_space<vmem>>, vector<24x12xbf16>
    %c0_33 = arith.constant 0 : index
    %c0_34 = arith.constant 0 : index
    %97 = vector.load %arg7[%c0_33, %c0_34] : memref<12x6xbf16, #tpu.memory_space<vmem>>, vector<12x6xbf16>
    %c0_35 = arith.constant 0 : index
    %c0_36 = arith.constant 0 : index
    %98 = vector.load %arg8[%c0_35, %c0_36] : memref<1x12xf32, #tpu.memory_space<vmem>>, vector<1x12xf32>
    %cst_37 = arith.constant dense<0.000000e+00> : vector<16x12xf32>
    %99 = tpu.matmul %95, %96, %cst_37 {dimension_numbers = #tpu.dot_dimension_numbers<[1], [0], [0], [1], [0, 0, 1, 1], [], []>} : vector<16x24xbf16>, vector<24x12xbf16>, vector<16x12xf32> -> vector<16x12xf32>
    %100 = arith.truncf %99 : vector<16x12xf32> to vector<16x12xbf16>
    %cst_38 = arith.constant dense<0.000000e+00> : vector<16x6xf32>
    %101 = tpu.matmul %100, %97, %cst_38 {dimension_numbers = #tpu.dot_dimension_numbers<[1], [0], [0], [1], [0, 0, 1, 1], [], []>} : vector<16x12xbf16>, vector<12x6xbf16>, vector<16x6xf32> -> vector<16x6xf32>
    %102 = vector.extract_strided_slice %101 {offsets = [0, 0], sizes = [16, 3], strides = [1, 1]} : vector<16x6xf32> to vector<16x3xf32>
    %103 = tpu.transpose %102, [1, 0] : vector<16x3xf32> -> vector<3x16xf32>
    %104 = vector.extract_strided_slice %101 {offsets = [0, 3], sizes = [16, 1], strides = [1, 1]} : vector<16x6xf32> to vector<16x1xf32>
    %105 = vector.extract_strided_slice %103 {offsets = [0, 0], sizes = [1, 16], strides = [1, 1]} : vector<3x16xf32> to vector<1x16xf32>
    %106 = vector.broadcast %104 : vector<16x1xf32> to vector<16x16xf32>
    %107 = vector.broadcast %105 : vector<1x16xf32> to vector<16x16xf32>
    %108 = arith.addf %106, %107 : vector<16x16xf32>
    %cst_39 = arith.constant 0.000000e+00 : f32
    %109 = vector.broadcast %cst_39 : f32 to vector<16x16xf32>
    %110 = arith.cmpf ogt, %108, %109 : vector<16x16xf32>
    %cst_40 = arith.constant 2.000000e-01 : f32
    %111 = vector.broadcast %cst_40 : f32 to vector<16x16xf32>
    %112 = arith.mulf %111, %108 : vector<16x16xf32>
    %113 = arith.select %110, %108, %112 : vector<16x16xi1>, vector<16x16xf32>
    %cst_41 = arith.constant -1.000000e+30 : f32
    %114 = vector.broadcast %cst_41 : f32 to vector<16x16xf32>
    %115 = arith.select %3, %113, %114 : vector<16x16xi1>, vector<16x16xf32>
    %cst_42 = arith.constant dense<0xFF800000> : vector<16xf32>
    %116 = vector.multi_reduction <maximumf>, %115, %cst_42 [1] : vector<16x16xf32> to vector<16xf32>
    %117 = vector.shape_cast %116 : vector<16xf32> to vector<16x1xf32>
    %118 = vector.broadcast %117 : vector<16x1xf32> to vector<16x16xf32>
    %119 = arith.subf %115, %118 : vector<16x16xf32>
    %120 = math.exp %119 : vector<16x16xf32>
    %cst_43 = arith.constant dense<0.000000e+00> : vector<16xf32>
    %121 = vector.multi_reduction <add>, %120, %cst_43 [1] : vector<16x16xf32> to vector<16xf32>
    %122 = vector.shape_cast %121 : vector<16xf32> to vector<16x1xf32>
    %123 = arith.truncf %120 : vector<16x16xf32> to vector<16x16xbf16>
    %124 = vector.extract_strided_slice %100 {offsets = [0, 0], sizes = [16, 4], strides = [1, 1]} : vector<16x12xbf16> to vector<16x4xbf16>
    %cst_44 = arith.constant dense<0.000000e+00> : vector<16x4xf32>
    %125 = tpu.matmul %123, %124, %cst_44 {dimension_numbers = #tpu.dot_dimension_numbers<[1], [0], [0], [1], [0, 0, 1, 1], [], []>} : vector<16x16xbf16>, vector<16x4xbf16>, vector<16x4xf32> -> vector<16x4xf32>
    %126 = vector.broadcast %122 : vector<16x1xf32> to vector<16x4xf32>
    %127 = arith.divf %125, %126 : vector<16x4xf32>
    %128 = vector.extract_strided_slice %101 {offsets = [0, 4], sizes = [16, 1], strides = [1, 1]} : vector<16x6xf32> to vector<16x1xf32>
    %129 = vector.extract_strided_slice %103 {offsets = [1, 0], sizes = [1, 16], strides = [1, 1]} : vector<3x16xf32> to vector<1x16xf32>
    %130 = vector.broadcast %128 : vector<16x1xf32> to vector<16x16xf32>
    %131 = vector.broadcast %129 : vector<1x16xf32> to vector<16x16xf32>
    %132 = arith.addf %130, %131 : vector<16x16xf32>
    %cst_45 = arith.constant 0.000000e+00 : f32
    %133 = vector.broadcast %cst_45 : f32 to vector<16x16xf32>
    %134 = arith.cmpf ogt, %132, %133 : vector<16x16xf32>
    %cst_46 = arith.constant 2.000000e-01 : f32
    %135 = vector.broadcast %cst_46 : f32 to vector<16x16xf32>
    %136 = arith.mulf %135, %132 : vector<16x16xf32>
    %137 = arith.select %134, %132, %136 : vector<16x16xi1>, vector<16x16xf32>
    %cst_47 = arith.constant -1.000000e+30 : f32
    %138 = vector.broadcast %cst_47 : f32 to vector<16x16xf32>
    %139 = arith.select %3, %137, %138 : vector<16x16xi1>, vector<16x16xf32>
    %cst_48 = arith.constant dense<0xFF800000> : vector<16xf32>
    %140 = vector.multi_reduction <maximumf>, %139, %cst_48 [1] : vector<16x16xf32> to vector<16xf32>
    %141 = vector.shape_cast %140 : vector<16xf32> to vector<16x1xf32>
    %142 = vector.broadcast %141 : vector<16x1xf32> to vector<16x16xf32>
    %143 = arith.subf %139, %142 : vector<16x16xf32>
    %144 = math.exp %143 : vector<16x16xf32>
    %cst_49 = arith.constant dense<0.000000e+00> : vector<16xf32>
    %145 = vector.multi_reduction <add>, %144, %cst_49 [1] : vector<16x16xf32> to vector<16xf32>
    %146 = vector.shape_cast %145 : vector<16xf32> to vector<16x1xf32>
    %147 = arith.truncf %144 : vector<16x16xf32> to vector<16x16xbf16>
    %148 = vector.extract_strided_slice %100 {offsets = [0, 4], sizes = [16, 4], strides = [1, 1]} : vector<16x12xbf16> to vector<16x4xbf16>
    %cst_50 = arith.constant dense<0.000000e+00> : vector<16x4xf32>
    %149 = tpu.matmul %147, %148, %cst_50 {dimension_numbers = #tpu.dot_dimension_numbers<[1], [0], [0], [1], [0, 0, 1, 1], [], []>} : vector<16x16xbf16>, vector<16x4xbf16>, vector<16x4xf32> -> vector<16x4xf32>
    %150 = vector.broadcast %146 : vector<16x1xf32> to vector<16x4xf32>
    %151 = arith.divf %149, %150 : vector<16x4xf32>
    %152 = vector.extract_strided_slice %101 {offsets = [0, 5], sizes = [16, 1], strides = [1, 1]} : vector<16x6xf32> to vector<16x1xf32>
    %153 = vector.extract_strided_slice %103 {offsets = [2, 0], sizes = [1, 16], strides = [1, 1]} : vector<3x16xf32> to vector<1x16xf32>
    %154 = vector.broadcast %152 : vector<16x1xf32> to vector<16x16xf32>
    %155 = vector.broadcast %153 : vector<1x16xf32> to vector<16x16xf32>
    %156 = arith.addf %154, %155 : vector<16x16xf32>
    %cst_51 = arith.constant 0.000000e+00 : f32
    %157 = vector.broadcast %cst_51 : f32 to vector<16x16xf32>
    %158 = arith.cmpf ogt, %156, %157 : vector<16x16xf32>
    %cst_52 = arith.constant 2.000000e-01 : f32
    %159 = vector.broadcast %cst_52 : f32 to vector<16x16xf32>
    %160 = arith.mulf %159, %156 : vector<16x16xf32>
    %161 = arith.select %158, %156, %160 : vector<16x16xi1>, vector<16x16xf32>
    %cst_53 = arith.constant -1.000000e+30 : f32
    %162 = vector.broadcast %cst_53 : f32 to vector<16x16xf32>
    %163 = arith.select %3, %161, %162 : vector<16x16xi1>, vector<16x16xf32>
    %cst_54 = arith.constant dense<0xFF800000> : vector<16xf32>
    %164 = vector.multi_reduction <maximumf>, %163, %cst_54 [1] : vector<16x16xf32> to vector<16xf32>
    %165 = vector.shape_cast %164 : vector<16xf32> to vector<16x1xf32>
    %166 = vector.broadcast %165 : vector<16x1xf32> to vector<16x16xf32>
    %167 = arith.subf %163, %166 : vector<16x16xf32>
    %168 = math.exp %167 : vector<16x16xf32>
    %cst_55 = arith.constant dense<0.000000e+00> : vector<16xf32>
    %169 = vector.multi_reduction <add>, %168, %cst_55 [1] : vector<16x16xf32> to vector<16xf32>
    %170 = vector.shape_cast %169 : vector<16xf32> to vector<16x1xf32>
    %171 = arith.truncf %168 : vector<16x16xf32> to vector<16x16xbf16>
    %172 = vector.extract_strided_slice %100 {offsets = [0, 8], sizes = [16, 4], strides = [1, 1]} : vector<16x12xbf16> to vector<16x4xbf16>
    %cst_56 = arith.constant dense<0.000000e+00> : vector<16x4xf32>
    %173 = tpu.matmul %171, %172, %cst_56 {dimension_numbers = #tpu.dot_dimension_numbers<[1], [0], [0], [1], [0, 0, 1, 1], [], []>} : vector<16x16xbf16>, vector<16x4xbf16>, vector<16x4xf32> -> vector<16x4xf32>
    %174 = vector.broadcast %170 : vector<16x1xf32> to vector<16x4xf32>
    %175 = arith.divf %173, %174 : vector<16x4xf32>
    %176 = tpu.concatenate %127, %151, %175 in 1 : vector<16x4xf32>, vector<16x4xf32>, vector<16x4xf32> -> vector<16x12xf32>
    %177 = vector.broadcast %98 : vector<1x12xf32> to vector<16x12xf32>
    %178 = arith.addf %176, %177 : vector<16x12xf32>
    %cst_57 = arith.constant 0.000000e+00 : f32
    %179 = vector.broadcast %cst_57 : f32 to vector<16x12xf32>
    %180 = arith.cmpf ogt, %178, %179 : vector<16x12xf32>
    %181 = math.exp %178 : vector<16x12xf32>
    %cst_58 = arith.constant 1.000000e+00 : f32
    %182 = vector.broadcast %cst_58 : f32 to vector<16x12xf32>
    %183 = arith.subf %181, %182 : vector<16x12xf32>
    %184 = arith.select %180, %178, %183 : vector<16x12xi1>, vector<16x12xf32>
    %185 = arith.truncf %184 : vector<16x12xf32> to vector<16x12xbf16>
    %c0_59 = arith.constant 0 : index
    %c0_60 = arith.constant 0 : index
    %186 = vector.load %arg9[%c0_59, %c0_60] : memref<12x6xbf16, #tpu.memory_space<vmem>>, vector<12x6xbf16>
    %c0_61 = arith.constant 0 : index
    %c0_62 = arith.constant 0 : index
    %187 = vector.load %arg10[%c0_61, %c0_62] : memref<6x6xbf16, #tpu.memory_space<vmem>>, vector<6x6xbf16>
    %c0_63 = arith.constant 0 : index
    %c0_64 = arith.constant 0 : index
    %188 = vector.load %arg11[%c0_63, %c0_64] : memref<1x6xf32, #tpu.memory_space<vmem>>, vector<1x6xf32>
    %cst_65 = arith.constant dense<0.000000e+00> : vector<16x6xf32>
    %189 = tpu.matmul %185, %186, %cst_65 {dimension_numbers = #tpu.dot_dimension_numbers<[1], [0], [0], [1], [0, 0, 1, 1], [], []>} : vector<16x12xbf16>, vector<12x6xbf16>, vector<16x6xf32> -> vector<16x6xf32>
    %190 = arith.truncf %189 : vector<16x6xf32> to vector<16x6xbf16>
    %cst_66 = arith.constant dense<0.000000e+00> : vector<16x6xf32>
    %191 = tpu.matmul %190, %187, %cst_66 {dimension_numbers = #tpu.dot_dimension_numbers<[1], [0], [0], [1], [0, 0, 1, 1], [], []>} : vector<16x6xbf16>, vector<6x6xbf16>, vector<16x6xf32> -> vector<16x6xf32>
    %192 = vector.extract_strided_slice %191 {offsets = [0, 0], sizes = [16, 3], strides = [1, 1]} : vector<16x6xf32> to vector<16x3xf32>
    %193 = tpu.transpose %192, [1, 0] : vector<16x3xf32> -> vector<3x16xf32>
    %194 = vector.extract_strided_slice %191 {offsets = [0, 3], sizes = [16, 1], strides = [1, 1]} : vector<16x6xf32> to vector<16x1xf32>
    %195 = vector.extract_strided_slice %193 {offsets = [0, 0], sizes = [1, 16], strides = [1, 1]} : vector<3x16xf32> to vector<1x16xf32>
    %196 = vector.broadcast %194 : vector<16x1xf32> to vector<16x16xf32>
    %197 = vector.broadcast %195 : vector<1x16xf32> to vector<16x16xf32>
    %198 = arith.addf %196, %197 : vector<16x16xf32>
    %cst_67 = arith.constant 0.000000e+00 : f32
    %199 = vector.broadcast %cst_67 : f32 to vector<16x16xf32>
    %200 = arith.cmpf ogt, %198, %199 : vector<16x16xf32>
    %cst_68 = arith.constant 2.000000e-01 : f32
    %201 = vector.broadcast %cst_68 : f32 to vector<16x16xf32>
    %202 = arith.mulf %201, %198 : vector<16x16xf32>
    %203 = arith.select %200, %198, %202 : vector<16x16xi1>, vector<16x16xf32>
    %cst_69 = arith.constant -1.000000e+30 : f32
    %204 = vector.broadcast %cst_69 : f32 to vector<16x16xf32>
    %205 = arith.select %3, %203, %204 : vector<16x16xi1>, vector<16x16xf32>
    %cst_70 = arith.constant dense<0xFF800000> : vector<16xf32>
    %206 = vector.multi_reduction <maximumf>, %205, %cst_70 [1] : vector<16x16xf32> to vector<16xf32>
    %207 = vector.shape_cast %206 : vector<16xf32> to vector<16x1xf32>
    %208 = vector.broadcast %207 : vector<16x1xf32> to vector<16x16xf32>
    %209 = arith.subf %205, %208 : vector<16x16xf32>
    %210 = math.exp %209 : vector<16x16xf32>
    %cst_71 = arith.constant dense<0.000000e+00> : vector<16xf32>
    %211 = vector.multi_reduction <add>, %210, %cst_71 [1] : vector<16x16xf32> to vector<16xf32>
    %212 = vector.shape_cast %211 : vector<16xf32> to vector<16x1xf32>
    %213 = arith.truncf %210 : vector<16x16xf32> to vector<16x16xbf16>
    %214 = vector.extract_strided_slice %190 {offsets = [0, 0], sizes = [16, 2], strides = [1, 1]} : vector<16x6xbf16> to vector<16x2xbf16>
    %cst_72 = arith.constant dense<0.000000e+00> : vector<16x2xf32>
    %215 = tpu.matmul %213, %214, %cst_72 {dimension_numbers = #tpu.dot_dimension_numbers<[1], [0], [0], [1], [0, 0, 1, 1], [], []>} : vector<16x16xbf16>, vector<16x2xbf16>, vector<16x2xf32> -> vector<16x2xf32>
    %216 = vector.broadcast %212 : vector<16x1xf32> to vector<16x2xf32>
    %217 = arith.divf %215, %216 : vector<16x2xf32>
    %218 = vector.extract_strided_slice %191 {offsets = [0, 4], sizes = [16, 1], strides = [1, 1]} : vector<16x6xf32> to vector<16x1xf32>
    %219 = vector.extract_strided_slice %193 {offsets = [1, 0], sizes = [1, 16], strides = [1, 1]} : vector<3x16xf32> to vector<1x16xf32>
    %220 = vector.broadcast %218 : vector<16x1xf32> to vector<16x16xf32>
    %221 = vector.broadcast %219 : vector<1x16xf32> to vector<16x16xf32>
    %222 = arith.addf %220, %221 : vector<16x16xf32>
    %cst_73 = arith.constant 0.000000e+00 : f32
    %223 = vector.broadcast %cst_73 : f32 to vector<16x16xf32>
    %224 = arith.cmpf ogt, %222, %223 : vector<16x16xf32>
    %cst_74 = arith.constant 2.000000e-01 : f32
    %225 = vector.broadcast %cst_74 : f32 to vector<16x16xf32>
    %226 = arith.mulf %225, %222 : vector<16x16xf32>
    %227 = arith.select %224, %222, %226 : vector<16x16xi1>, vector<16x16xf32>
    %cst_75 = arith.constant -1.000000e+30 : f32
    %228 = vector.broadcast %cst_75 : f32 to vector<16x16xf32>
    %229 = arith.select %3, %227, %228 : vector<16x16xi1>, vector<16x16xf32>
    %cst_76 = arith.constant dense<0xFF800000> : vector<16xf32>
    %230 = vector.multi_reduction <maximumf>, %229, %cst_76 [1] : vector<16x16xf32> to vector<16xf32>
    %231 = vector.shape_cast %230 : vector<16xf32> to vector<16x1xf32>
    %232 = vector.broadcast %231 : vector<16x1xf32> to vector<16x16xf32>
    %233 = arith.subf %229, %232 : vector<16x16xf32>
    %234 = math.exp %233 : vector<16x16xf32>
    %cst_77 = arith.constant dense<0.000000e+00> : vector<16xf32>
    %235 = vector.multi_reduction <add>, %234, %cst_77 [1] : vector<16x16xf32> to vector<16xf32>
    %236 = vector.shape_cast %235 : vector<16xf32> to vector<16x1xf32>
    %237 = arith.truncf %234 : vector<16x16xf32> to vector<16x16xbf16>
    %238 = vector.extract_strided_slice %190 {offsets = [0, 2], sizes = [16, 2], strides = [1, 1]} : vector<16x6xbf16> to vector<16x2xbf16>
    %cst_78 = arith.constant dense<0.000000e+00> : vector<16x2xf32>
    %239 = tpu.matmul %237, %238, %cst_78 {dimension_numbers = #tpu.dot_dimension_numbers<[1], [0], [0], [1], [0, 0, 1, 1], [], []>} : vector<16x16xbf16>, vector<16x2xbf16>, vector<16x2xf32> -> vector<16x2xf32>
    %240 = vector.broadcast %236 : vector<16x1xf32> to vector<16x2xf32>
    %241 = arith.divf %239, %240 : vector<16x2xf32>
    %242 = vector.extract_strided_slice %191 {offsets = [0, 5], sizes = [16, 1], strides = [1, 1]} : vector<16x6xf32> to vector<16x1xf32>
    %243 = vector.extract_strided_slice %193 {offsets = [2, 0], sizes = [1, 16], strides = [1, 1]} : vector<3x16xf32> to vector<1x16xf32>
    %244 = vector.broadcast %242 : vector<16x1xf32> to vector<16x16xf32>
    %245 = vector.broadcast %243 : vector<1x16xf32> to vector<16x16xf32>
    %246 = arith.addf %244, %245 : vector<16x16xf32>
    %cst_79 = arith.constant 0.000000e+00 : f32
    %247 = vector.broadcast %cst_79 : f32 to vector<16x16xf32>
    %248 = arith.cmpf ogt, %246, %247 : vector<16x16xf32>
    %cst_80 = arith.constant 2.000000e-01 : f32
    %249 = vector.broadcast %cst_80 : f32 to vector<16x16xf32>
    %250 = arith.mulf %249, %246 : vector<16x16xf32>
    %251 = arith.select %248, %246, %250 : vector<16x16xi1>, vector<16x16xf32>
    %cst_81 = arith.constant -1.000000e+30 : f32
    %252 = vector.broadcast %cst_81 : f32 to vector<16x16xf32>
    %253 = arith.select %3, %251, %252 : vector<16x16xi1>, vector<16x16xf32>
    %cst_82 = arith.constant dense<0xFF800000> : vector<16xf32>
    %254 = vector.multi_reduction <maximumf>, %253, %cst_82 [1] : vector<16x16xf32> to vector<16xf32>
    %255 = vector.shape_cast %254 : vector<16xf32> to vector<16x1xf32>
    %256 = vector.broadcast %255 : vector<16x1xf32> to vector<16x16xf32>
    %257 = arith.subf %253, %256 : vector<16x16xf32>
    %258 = math.exp %257 : vector<16x16xf32>
    %cst_83 = arith.constant dense<0.000000e+00> : vector<16xf32>
    %259 = vector.multi_reduction <add>, %258, %cst_83 [1] : vector<16x16xf32> to vector<16xf32>
    %260 = vector.shape_cast %259 : vector<16xf32> to vector<16x1xf32>
    %261 = arith.truncf %258 : vector<16x16xf32> to vector<16x16xbf16>
    %262 = vector.extract_strided_slice %190 {offsets = [0, 4], sizes = [16, 2], strides = [1, 1]} : vector<16x6xbf16> to vector<16x2xbf16>
    %cst_84 = arith.constant dense<0.000000e+00> : vector<16x2xf32>
    %263 = tpu.matmul %261, %262, %cst_84 {dimension_numbers = #tpu.dot_dimension_numbers<[1], [0], [0], [1], [0, 0, 1, 1], [], []>} : vector<16x16xbf16>, vector<16x2xbf16>, vector<16x2xf32> -> vector<16x2xf32>
    %264 = vector.broadcast %260 : vector<16x1xf32> to vector<16x2xf32>
    %265 = arith.divf %263, %264 : vector<16x2xf32>
    %266 = tpu.concatenate %217, %241, %265 in 1 : vector<16x2xf32>, vector<16x2xf32>, vector<16x2xf32> -> vector<16x6xf32>
    %267 = vector.broadcast %188 : vector<1x6xf32> to vector<16x6xf32>
    %268 = arith.addf %266, %267 : vector<16x6xf32>
    %c0_85 = arith.constant 0 : index
    %c0_86 = arith.constant 0 : index
    %269 = vector.load %arg2[%c0_85, %c0_86] : memref<2x16xbf16, #tpu.memory_space<vmem>>, vector<2x16xbf16>
    %270 = arith.truncf %268 : vector<16x6xf32> to vector<16x6xbf16>
    %cst_87 = arith.constant dense<0.000000e+00> : vector<2x6xf32>
    %271 = tpu.matmul %269, %270, %cst_87 {dimension_numbers = #tpu.dot_dimension_numbers<[1], [0], [0], [1], [0, 0, 1, 1], [], []>} : vector<2x16xbf16>, vector<16x6xbf16>, vector<2x6xf32> -> vector<2x6xf32>
    %cst_88 = arith.constant 0.000000e+00 : f32
    %272 = vector.broadcast %cst_88 : f32 to vector<2x6xf32>
    %273 = arith.maximumf %271, %272 : vector<2x6xf32>
    %274 = arith.truncf %273 : vector<2x6xf32> to vector<2x6xbf16>
    %c0_89 = arith.constant 0 : index
    %c0_90 = arith.constant 0 : index
    %275 = vector.load %arg12[%c0_89, %c0_90] : memref<6x1xbf16, #tpu.memory_space<vmem>>, vector<6x1xbf16>
    %cst_91 = arith.constant dense<0.000000e+00> : vector<2x1xf32>
    %276 = tpu.matmul %274, %275, %cst_91 {dimension_numbers = #tpu.dot_dimension_numbers<[1], [0], [0], [1], [0, 0, 1, 1], [], []>} : vector<2x6xbf16>, vector<6x1xbf16>, vector<2x1xf32> -> vector<2x1xf32>
    %c0_92 = arith.constant 0 : index
    %c0_93 = arith.constant 0 : index
    %277 = vector.load %arg13[%c0_92, %c0_93] : memref<1x1xf32, #tpu.memory_space<vmem>>, vector<1x1xf32>
    %278 = vector.broadcast %277 : vector<1x1xf32> to vector<2x1xf32>
    %279 = arith.addf %276, %278 : vector<2x1xf32>
    %c0_94 = arith.constant 0 : index
    %c0_95 = arith.constant 0 : index
    %280 = vector.load %arg14[%c0_94, %c0_95] : memref<2x1xf32, #tpu.memory_space<vmem>>, vector<2x1xf32>
    tpu.vector_store %arg14[%c0_94, %c0_95], %279 {strides = array<i32>} : memref<2x1xf32, #tpu.memory_space<vmem>>, vector<2x1xf32>,
    return
  }
}

</mosaic_0001>

<bundles_post_ra>
// kernel: gat_forward.1
= control target key start
LH: loop header
LB: loop body
LE: loop exit
PB: predicated region body
PF: predicated region fallthrough
CT: control target
= control target key end

     0   :  { %v1832_v0 = vmov 0.0   ;;  %vm1833_vm0 = vmmov 0   ;;  %vm71_vm1 = vcmask 130048   ;;  %vm130_vm2 = vcmask 1043456   ;;  %s1838_s22 = smov 112   ;;  %s1839_s25 = smov 8   ;;  %s2201_s3 = inlined_call_operand.vmem [shape: bf16[16,24], index: 3, kind: input, shape index: {}]   ;;  %s2202_s0 = inlined_call_operand.vmem [shape: f32[16,16], index: 0, kind: input, shape index: {}]   ;;  %s2203_s4 = inlined_call_operand.vmem [shape: bf16[24,6], index: 4, kind: input, shape index: {}]   ;;  %s2204_s6 = inlined_call_operand.vmem [shape: bf16[24,12], index: 6, kind: input, shape index: {}]   ;;  %s2205_s1 = inlined_call_operand.vmem [shape: bf16[16,16], index: 1, kind: input, shape index: {}]   ;;  %s2206_s5 = inlined_call_operand.vmem [shape: f32[1,24], index: 5, kind: input, shape index: {}]   ;;  %s2207_s7 = inlined_call_operand.vmem [shape: bf16[12,6], index: 7, kind: input, shape index: {}]   ;;  %s2208_s9 = inlined_call_operand.vmem [shape: bf16[12,6], index: 9, kind: input, shape index: {}]   ;;  %s2209_s8 = inlined_call_operand.vmem [shape: f32[1,12], index: 8, kind: input, shape index: {}]   ;;  %s2210_s10 = inlined_call_operand.vmem [shape: bf16[6,6], index: 10, kind: input, shape index: {}]   ;;  %s2211_s11 = inlined_call_operand.vmem [shape: f32[1,6], index: 11, kind: input, shape index: {}]   ;;  %s2212_s2 = inlined_call_operand.vmem [shape: bf16[2,16], index: 2, kind: input, shape index: {}]   ;;  %s2213_s12 = inlined_call_operand.vmem [shape: bf16[6,1], index: 12, kind: input, shape index: {}]   ;;  %s2214_s13 = inlined_call_operand.<no memory space> [shape: f32[1,1], index: 13, kind: input, shape index: {}]   ;;  %s2215_s14 = inlined_call_operand.vmem [shape: f32[2,1], index: 14, kind: output, shape index: {}]  }
   0x1   :  { %1610 = vmatprep.subr.bf16.mxu0 %v1832_v0  ;;  %v1745_v1 = vld [vmem:[%s2201_s3] sm:$0xff]   ;;  %1612 = vmatprep.mubr.msk.bf16.mxu0 %vm1833_vm0, %v1832_v0  ;;  %v57_v3 = vld [vmem:[%s2202_s0 + $0x8] sm:$0xff]  ;;  %v1834_v8 = vmov 4   ;;  %v1835_v9 = vmov 3   ;;  %vm126_vm3 = vcmask 195584   ;;  %v1836_v18 = vmov 5  }
   0x2   :  { %v56_v2 = vld [vmem:[%s2202_s0] sm:$0xff]  ;;  %1616 = vmatprep.subr.bf16.mxu1 %v1832_v0  ;;  %1620 = vmatprep.mubr.msk.bf16.mxu1 %vm1833_vm0, %v1832_v0  ;;  %v1746_v5 = vld [vmem:[%s2203_s4 + $0x8] ss:$0 sps:$4 sm:$0xff]   ;;  %v217_v21 = vlaneseq  ;;  %s1840_s26 = smov 16   ;;  %vm499_vm12 = vcmask 64512   ;;  %vm595_vm15 = vcmask 1045504  }
   0x3   :  { %1611 = vmatpush3.bf16.msra.mxu0 %v1745_v1  ;;  %v58_v4 = vpack.c.bf16 %v57_v3, %v56_v2  ;;  %v132_v6 = vsel %vm130_vm2, %v1746_v5, 0  ;;  %v1748_v7 = vld [vmem:[%s2203_s4] sm:$0xff]   ;;  %1730 = vset.pattern.permute.xlu1 %v1834_v8  ;;  %s1842_s15 = smov 4   ;;  %s1844_s19 = smov 2  }
   0x4   :  { %1624 = vmatprep.subr.bf16.mxu0 %v1832_v0  ;;  %1617 = vmatpush3.bf16.msra.mxu1 %v132_v6  ;;  %v218_v23 = vshrl.u32 %v217_v21, 7  ;;  %v1571_v29 = vld [vmem:[%s2205_s1] sm:$0xff]   ;;  %s1837_s1 = smov 120  }
   0x5   :  { %1618 = vmatprep.subr.bf16.mxu1 %v1832_v0  ;;  %1729 = vset.pattern.permute.xlu0 %v1835_v9  ;;  %v1572_v31 = vunpack.c.l.bf16 %v1571_v29  ;;  %v1573_v56 = vunpack.c.h.bf16 %v1571_v29 }
   0x6   :  { %1613 = vmatmul.mubr.msk.bf16.vlgmr.msra.gmra.mxu0 %vm71_vm1, %v58_v4  ;;  %v1962_v26 = vsub.s32 0, %v218_v23  ;;  %v1964_v27 = vsub.s32 1, %v218_v23  ;;  %v1966_v28 = vsub.s32 2, %v218_v23 }
   0x7   :  { %1626 = vmatprep.mubr.msk.bf16.mxu0 %vm1833_vm0, %v1832_v0  ;;  %vm1974_vm4 = vcmp.gt.f32.partialorder %v1572_v31, 0.5  ;;  %vm1989_vm9 = vcmp.gt.f32.partialorder %v1573_v56, 0.5 }
   0x8   :  { %1619 = vmatpush3.bf16.msra.mxu1 %v1748_v7 }
   0x9   :  { %1630 = vmatprep.subr.bf16.mxu1 %v1832_v0 }
  0xc6   :  { %v109_v10 = vpop.f32.mrf.mxu0 }
  0xc8   :  { %v1614_v11 = vpop.f32.mrf.mxu0 }
  0xca   :  { %v112_v12 = vpop.f32.mrf.mxu0 }
  0xcb   :  { %v1950_v13 = vpack.c.bf16 %v112_v12, %v109_v10 }
  0xcc   :  { %v1615_v14 = vpop.f32.mrf.mxu0 }
  0xcd   :  { %1621 = vmatmul.mubr.msk.bf16.vlgmr.msra.gmra.mxu1 %vm126_vm3, %v1950_v13  ;;  %1625 = vmatpush3.bf16.msra.mxu0 %v1950_v13 }
  0xce   :  { %1636 = vmatprep.subr.bf16.mxu0 %v1832_v0  ;;  %1632 = vmatprep.mubr.msk.bf16.mxu1 %vm1833_vm0, %v1832_v0 }
 0x18d   :  { %v168_v15 = vpop.f32.mrf.mxu1 }
 0x18e   :  { %299 = vperm.xlu1 %1730, %v168_v15   ;;  %209 = vperm.xlu0 %1729, %v168_v15  }
 0x18f   :  { %v1622_v16 = vpop.f32.mrf.mxu1 }
 0x191   :  { %v171_v17 = vpop.f32.mrf.mxu1 }
 0x192   :  { %1731 = vset.pattern.permute.xlu0 %v1836_v18  ;;  %303 = vperm.xlu1 %1730, %v171_v17  }
 0x193   :  { %392 = vperm.xlu0 %1731, %v168_v15   ;;  %v1623_v19 = vpop.f32.mrf.mxu1 }
 0x196   :  { %1733 = vset.pattern.permute.xlu1 %v1836_v18 }
 0x197   :  { %1732 = vset.pattern.permute.xlu0 %v1835_v9  ;;  %396 = vperm.xlu1 %1733, %v171_v17  }
 0x198   :  { %214 = vperm.xlu0 %1732, %v171_v17  }
 0x1c0   :  { %175 = vxpose.xlu1.b32.start [1/2] (short) (narrow) %v168_v15, 8 }
 0x1c4   :  { %176 = vxpose.xlu1.b32.end [2/2] (short) (narrow) %v171_v17, 8 }
 0x1e2   :  { %1734 = vset.pattern.permute.xlu1 %v1835_v9 }
 0x209   :  { %v300_v20 = vpop.permute.xlu1 %299  ;;  %v210_v25 = vpop.permute.xlu0 %209 }
 0x20d   :  { %v304_v22 = vpop.permute.xlu1 %303 }
 0x20e   :  { %v393_v35 = vpop.permute.xlu0 %392 }
 0x212   :  { %v397_v24 = vpop.permute.xlu1 %396 }
 0x213   :  { %v215_v53 = vpop.permute.xlu0 %214 }
 0x23c   :  { %v191_v30 = vpop.trf.xlu1 }
 0x23d   :  { %v220_v32 = vrot.slane %v191_v30, %v1962_v26  ;;  %v309_v33 = vrot.slane %v191_v30, %v1964_v27  ;;  %v402_v34 = vrot.slane %v191_v30, %v1966_v28 }
 0x23f   :  { %v221_v36 = vadd.f32 %v220_v32, %v210_v25  ;;  %v310_v37 = vadd.f32 %v309_v33, %v300_v20  ;;  %v403_v38 = vadd.f32 %v402_v34, %v393_v35  ;;  %v404_v39 = vadd.f32 %v402_v34, %v397_v24 }
 0x240   :  { %v222_v54 = vadd.f32 %v220_v32, %v215_v53  ;;  %v311_v55 = vadd.f32 %v309_v33, %v304_v22 }
 0x241   :  { %vm223_vm5 = vcmp.gt.f32.partialorder %v221_v36, 0.0  ;;  %v225_v41 = vmul.f32 0.2, %v221_v36  ;;  %vm312_vm6 = vcmp.gt.f32.partialorder %v310_v37, 0.0  ;;  %v314_v42 = vmul.f32 0.2, %v310_v37 }
 0x242   :  { %vm405_vm7 = vcmp.gt.f32.partialorder %v403_v38, 0.0  ;;  %v407_v43 = vmul.f32 0.2, %v403_v38  ;;  %v226_v57 = vmul.f32 0.2, %v222_v54  ;;  %vm224_vm8 = vcmp.gt.f32.partialorder %v222_v54, 0.0 }
 0x243   :  { %v227_v44 = vsel %vm223_vm5, %v221_v36, %v225_v41  ;;  %v316_v45 = vsel %vm312_vm6, %v310_v37, %v314_v42  ;;  %v315_v60 = vmul.f32 0.2, %v311_v55  ;;  %vm313_vm10 = vcmp.gt.f32.partialorder %v311_v55, 0.0 }
 0x244   :  { %v409_v46 = vsel %vm405_vm7, %v403_v38, %v407_v43  ;;  %v229_v47 = vsel %vm1974_vm4, %v227_v44, -1e+30  ;;  %v318_v51 = vsel %vm1974_vm4, %v316_v45, -1e+30  ;;  %v228_v59 = vsel %vm224_vm8, %v222_v54, %v226_v57  ;;  %v1747_v38 = vld [vmem:[%s2204_s6 + $0x8] ss:$0 sps:$4 sm:$0xff]  }
 0x245   :  { %v411_v48 = vsel %vm1974_vm4, %v409_v46, -1e+30  ;;  %v231_v49 = vsel %vm71_vm1, %v229_v47, -inf  ;;  %v320_v52 = vsel %vm71_vm1, %v318_v51, -inf  ;;  %v230_v61 = vsel %vm1989_vm9, %v228_v59, -1e+30 }
 0x246   :  { %v413_v50 = vsel %vm71_vm1, %v411_v48, -inf  ;;  %232 = vmax.xlane.f32.xlu0 %v231_v49  ;;  %v317_v62 = vsel %vm313_vm10, %v311_v55, %v315_v60  ;;  %v408_v63 = vmul.f32 0.2, %v404_v39  ;;  %vm406_vm11 = vcmp.gt.f32.partialorder %v404_v39, 0.0 }
 0x247   :  { %414 = vmax.xlane.f32.xlu1 %v413_v50  ;;  %v234_v1 = vsel %vm71_vm1, %v230_v61, -inf  ;;  %v319_v2 = vsel %vm1989_vm9, %v317_v62, -1e+30  ;;  %v542_v43 = vsel %vm130_vm2, %v1747_v38, 0  ;;  %vm591_vm2 = vcmask 97280  }
 0x248   :  { %v410_v3 = vsel %vm406_vm11, %v404_v39, %v408_v63  ;;  %v323_v4 = vsel %vm71_vm1, %v319_v2, -inf  ;;  %vm964_vm11 = vcmask 31744  }
 0x249   :  { %v412_v5 = vsel %vm1989_vm9, %v410_v3, -1e+30 }
 0x24a   :  { %321 = vmax.xlane.f32.xlu0 %v320_v52  ;;  %v416_v6 = vsel %vm71_vm1, %v412_v5, -inf }
 0x260   :  { %340 = vrot.lane.b32.xlu0 %v1950_v13, %s1837_s1 }
 0x27f   :  { %235 = vmax.xlane.f32.xlu0 %v234_v1 }
 0x283   :  { %324 = vmax.xlane.f32.xlu0 %v323_v4 }
 0x287   :  { %417 = vmax.xlane.f32.xlu0 %v416_v6 }
 0x29d   :  { %432 = vrot.lane.b32.xlu0 %v1950_v13, %s1838_s22 }
 0x2cf   :  { %v233_v7 = vpop.xlane.xlu0 %232 }
 0x2d0   :  { %v415_v10 = vpop.xlane.xlu1 %414  ;;  %v237_v22 = vsub.f32 %v229_v47, %v233_v7 }
 0x2d1   :  { %v419_v11 = vsub.f32 %v411_v48, %v415_v10 }
 0x2d2   :  { %v239_v23 = vmul.f32 1.442695, %v237_v22  ;;  %v1546_v22 = vld [vmem:[%s2206_s5] ss:$0 sm:$0xff] }
 0x2d3   :  { %v421_v12 = vmul.f32 1.442695, %v419_v11  ;;  %v322_v14 = vpop.xlane.xlu0 %321 }
 0x2d4   :  { %v326_v15 = vsub.f32 %v318_v51, %v322_v14 }
 0x2d5   :  { %1752 = vpow2.f32 %v421_v12 }
 0x2d6   :  { %v328_v16 = vmul.f32 1.442695, %v326_v15 }
 0x2d7   :  { %v341_v17 = vpop.permute.xlu0 %340 }
 0x2d8   :  { %1754 = vpow2.f32 %v328_v16  ;;  %1631 = vmatpush3.bf16.msra.mxu1 %v341_v17  ;;  %v1749_v16 = vld [vmem:[%s2204_s6] sm:$0xff]  }
 0x2d9   :  { %1642 = vmatprep.subr.bf16.mxu1 %v1832_v0  ;;  %1756 = vpow2.f32 %v239_v23 }
 0x2e2   :  { %v1753_v19 = vpop.eup %1752 }
 0x2e3   :  { %v425_v20 = vsel %vm71_vm1, %v1753_v19, 0.0 }
 0x2e4   :  { %426 = vadd.xlane.f32.xlu1 %v425_v20 }
 0x2e5   :  { %v1755_v21 = vpop.eup %1754 }
 0x2e6   :  { %v332_v13 = vsel %vm71_vm1, %v1755_v21, 0.0  ;;  %v1757_v36 = vpop.eup %1756 }
 0x2e7   :  { %333 = vadd.xlane.f32.xlu0 %v332_v13  ;;  %v243_v49 = vsel %vm71_vm1, %v1757_v36, 0.0 }
 0x308   :  { %v236_v24 = vpop.xlane.xlu0 %235 }
 0x309   :  { %v238_v25 = vsub.f32 %v230_v61, %v236_v24 }
 0x30b   :  { %v241_v29 = vmul.f32 1.442695, %v238_v25 }
 0x30c   :  { %v325_v30 = vpop.xlane.xlu0 %324 }
 0x30d   :  { %1758 = vpow2.f32 %v241_v29  ;;  %v327_v31 = vsub.f32 %v319_v2, %v325_v30 }
 0x30f   :  { %v330_v32 = vmul.f32 1.442695, %v327_v31 }
 0x310   :  { %v418_v33 = vpop.xlane.xlu0 %417 }
 0x311   :  { %1760 = vpow2.f32 %v330_v32  ;;  %v420_v34 = vsub.f32 %v412_v5, %v418_v33 }
 0x313   :  { %v423_v35 = vmul.f32 1.442695, %v420_v34 }
 0x314   :  { %v433_v41 = vpop.permute.xlu0 %432 }
 0x315   :  { %1762 = vpow2.f32 %v423_v35 }
 0x31a   :  { %v1759_v37 = vpop.eup %1758 }
 0x31b   :  { %v249_v39 = vpack.c.bf16 %v1759_v37, %v1757_v36  ;;  %v246_v50 = vsel %vm71_vm1, %v1759_v37, 0.0 }
 0x31d   :  { %1627 = vmatmul.mubr.msk.bf16.vlgmr.msra.gmra.mxu0 %vm71_vm1, %v249_v39 }
 0x31e   :  { %v1761_v42 = vpop.eup %1760  ;;  %1637 = vmatpush3.bf16.msra.mxu0 %v433_v41  ;;  %1638 = vmatprep.mubr.msk.bf16.mxu0 %vm1833_vm0, %v1832_v0 }
 0x31f   :  { %v335_v44 = vsel %vm71_vm1, %v1761_v42, 0.0  ;;  %v338_v45 = vpack.c.bf16 %v1761_v42, %v1755_v21  ;;  %1650 = vmatprep.subr.bf16.mxu0 %v1832_v0 }
 0x320   :  { %336 = vadd.xlane.f32.xlu1 %v335_v44 }
 0x321   :  { %1633 = vmatmul.mubr.msk.bf16.vlgmr.msra.gmra.mxu1 %vm71_vm1, %v338_v45 }
 0x322   :  { %v1763_v46 = vpop.eup %1762  ;;  %1643 = vmatpush3.bf16.msra.mxu1 %v542_v43  ;;  %1646 = vmatprep.mubr.msk.bf16.mxu1 %vm1833_vm0, %v1832_v0 }
 0x323   :  { %v428_v47 = vsel %vm71_vm1, %v1763_v46, 0.0  ;;  %v431_v48 = vpack.c.bf16 %v1763_v46, %v1753_v19  ;;  %1644 = vmatprep.subr.bf16.mxu1 %v1832_v0 }
 0x324   :  { %429 = vadd.xlane.f32.xlu1 %v428_v47  ;;  %v1750_v47 = vld [vmem:[%s2207_s7] sm:$0x3f]   ;;  %s1841_s7 = smov 124  }
 0x325   :  { %1639 = vmatmul.mubr.msk.bf16.vlgmr.msra.gmra.mxu0 %vm71_vm1, %v431_v48  ;;  %v597_v48 = vsel %vm595_vm15, %v1750_v47, 0 }
 0x326   :  { %1652 = vmatprep.mubr.msk.bf16.mxu0 %vm1833_vm0, %v1832_v0  ;;  %1645 = vmatpush3.bf16.msra.mxu1 %v1749_v16 }
 0x327   :  { %1656 = vmatprep.subr.bf16.mxu1 %v1832_v0  ;;  %1651 = vmatpush3.bf16.msra.mxu0 %v597_v48 }
 0x328   :  { %244 = vadd.xlane.f32.xlu1 %v243_v49  ;;  %1662 = vmatprep.subr.bf16.mxu0 %v1832_v0 }
 0x32c   :  { %247 = vadd.xlane.f32.xlu1 %v246_v50 }
 0x36d   :  { %v427_v51 = vpop.xlane.xlu1 %426 }
 0x370   :  { %v334_v52 = vpop.xlane.xlu0 %333 }
 0x371   :  { %1764 = vrcp.f32 %v334_v52 }
 0x372   :  { %1766 = vrcp.f32 %v427_v51 }
 0x37e   :  { %v1765_v57 = vpop.eup %1764 }
 0x37f   :  { %v1767_v1 = vpop.eup %1766 }
 0x3a9   :  { %v337_v53 = vpop.xlane.xlu1 %336 }
 0x3aa   :  { %1768 = vrcp.f32 %v337_v53 }
 0x3ad   :  { %v430_v54 = vpop.xlane.xlu1 %429 }
 0x3ae   :  { %1770 = vrcp.f32 %v430_v54 }
 0x3b1   :  { %v245_v17 = vpop.xlane.xlu1 %244 }
 0x3b2   :  { %1772 = vrcp.f32 %v245_v17 }
 0x3b5   :  { %v248_v19 = vpop.xlane.xlu1 %247 }
 0x3b6   :  { %1774 = vrcp.f32 %v248_v19 }
 0x3b7   :  { %v1769_v2 = vpop.eup %1768 }
 0x3bb   :  { %v1771_v11 = vpop.eup %1770 }
 0x3bf   :  { %v1773_v21 = vpop.eup %1772 }
 0x3c3   :  { %v1775_v25 = vpop.eup %1774 }
 0x3dd   :  { %v287_v55 = vpop.f32.mrf.mxu0 }
 0x3de   :  { %v295_v13 = vmul.f32 %v1773_v21, %v287_v55 }
 0x3df   :  { %v1628_v56 = vpop.f32.mrf.mxu0 }
 0x3e1   :  { %v290_v59 = vpop.f32.mrf.mxu0  ;;  %v380_v60 = vpop.f32.mrf.mxu1 }
 0x3e2   :  { %v388_v61 = vmul.f32 %v1765_v57, %v380_v60  ;;  %v297_v31 = vmul.f32 %v1775_v25, %v290_v59 }
 0x3e3   :  { %v1629_v62 = vpop.f32.mrf.mxu0  ;;  %v1634_v63 = vpop.f32.mrf.mxu1 }
 0x3e4   :  { %485 = vrot.lane.b32.xlu1 %v388_v61, %s1839_s25 }
 0x3e5   :  { %v383_v3 = vpop.f32.mrf.mxu1  ;;  %v472_v4 = vpop.f32.mrf.mxu0 }
 0x3e6   :  { %v390_v5 = vmul.f32 %v1769_v2, %v383_v3  ;;  %v480_v6 = vmul.f32 %v1767_v1, %v472_v4 }
 0x3e7   :  { %v1635_v7 = vpop.f32.mrf.mxu1  ;;  %v1640_v10 = vpop.f32.mrf.mxu0 }
 0x3e8   :  { %487 = vrot.lane.b32.xlu0 %v390_v5, %s1839_s25  ;;  %493 = vrot.lane.b32.xlu1 %v480_v6, %s1840_s26 }
 0x3e9   :  { %v475_v12 = vpop.f32.mrf.mxu0 }
 0x3ea   :  { %v482_v14 = vmul.f32 %v1771_v11, %v475_v12 }
 0x3eb   :  { %v1641_v15 = vpop.f32.mrf.mxu0 }
 0x3ec   :  { %495 = vrot.lane.b32.xlu1 %v482_v14, %s1840_s26 }
 0x456   :  { %v486_v20 = vpop.permute.xlu1 %485 }
 0x457   :  { %v500_v23 = vsel %vm499_vm12, %v295_v13, %v486_v20 }
 0x45a   :  { %v494_v24 = vpop.permute.xlu1 %493  ;;  %v488_v29 = vpop.permute.xlu0 %487 }
 0x45b   :  { %v502_v30 = vsel %vm71_vm1, %v500_v23, %v494_v24  ;;  %v501_v33 = vsel %vm499_vm12, %v297_v31, %v488_v29 }
 0x45c   :  { %v510_v32 = vadd.f32 %v1546_v22, %v502_v30 }
 0x45e   :  { %v514_v34 = vmul.f32 1.442695, %v510_v32  ;;  %v496_v35 = vpop.permute.xlu1 %495  ;;  %vm512_vm13 = vcmp.gt.f32.partialorder %v510_v32, 0.0 }
 0x45f   :  { %v503_v36 = vsel %vm71_vm1, %v501_v33, %v496_v35 }
 0x460   :  { %1776 = vpow2.f32 %v514_v34  ;;  %v511_v37 = vadd.f32 %v1546_v22, %v503_v36 }
 0x462   :  { %v516_v38 = vmul.f32 1.442695, %v511_v37  ;;  %vm513_vm14 = vcmp.gt.f32.partialorder %v511_v37, 0.0 }
 0x464   :  { %1778 = vpow2.f32 %v516_v38 }
 0x46d   :  { %v1777_v39 = vpop.eup %1776 }
 0x46e   :  { %v1547_v41 = vadd.f32 -1.0, %v1777_v39 }
 0x470   :  { %v520_v44 = vsel %vm512_vm13, %v510_v32, %v1547_v41 }
 0x471   :  { %v1779_v42 = vpop.eup %1778 }
 0x472   :  { %v1548_v43 = vadd.f32 -1.0, %v1779_v42 }
 0x474   :  { %v521_v45 = vsel %vm513_vm14, %v511_v37, %v1548_v43 }
 0x475   :  { %v522_v46 = vpack.c.bf16 %v521_v45, %v520_v44 }
 0x477   :  { %1647 = vmatmul.mubr.msk.bf16.vlgmr.msra.gmra.mxu1 %vm126_vm3, %v522_v46 }
 0x478   :  { %1658 = vmatprep.mubr.msk.bf16.mxu1 %vm1833_vm0, %v1832_v0 }
 0x537   :  { %v578_v49 = vpop.f32.mrf.mxu1 }
 0x539   :  { %v1648_v50 = vpop.f32.mrf.mxu1 }
 0x53b   :  { %v581_v51 = vpop.f32.mrf.mxu1 }
 0x53c   :  { %v2046_v52 = vpack.c.bf16 %v581_v51, %v578_v49 }
 0x53d   :  { %v1649_v53 = vpop.f32.mrf.mxu1 }
 0x53e   :  { %1653 = vmatmul.mubr.msk.bf16.vlgmr.msra.gmra.mxu0 %vm591_vm2, %v2046_v52  ;;  %1657 = vmatpush3.bf16.msra.mxu1 %v2046_v52 }
 0x53f   :  { %1668 = vmatprep.subr.bf16.mxu1 %v1832_v0  ;;  %1664 = vmatprep.mubr.msk.bf16.mxu0 %vm1833_vm0, %v1832_v0 }
 0x5fe   :  { %v633_v54 = vpop.f32.mrf.mxu0 }
 0x5ff   :  { %674 = vperm.xlu1 %1734, %v633_v54  }
 0x600   :  { %v1654_v55 = vpop.f32.mrf.mxu0 }
 0x602   :  { %v636_v56 = vpop.f32.mrf.mxu0 }
 0x603   :  { %1735 = vset.pattern.permute.xlu1 %v1834_v8  ;;  %679 = vperm.xlu0 %1732, %v636_v56  }
 0x604   :  { %764 = vperm.xlu1 %1735, %v633_v54   ;;  %v1655_v57 = vpop.f32.mrf.mxu0 }
 0x607   :  { %1736 = vset.pattern.permute.xlu0 %v1836_v18 }
 0x608   :  { %768 = vperm.xlu1 %1735, %v636_v56   ;;  %857 = vperm.xlu0 %1736, %v633_v54  }
 0x60c   :  { %1737 = vset.pattern.permute.xlu1 %v1836_v18  ;;  %1738 = vset.pattern.permute.xlu0 %v1835_v9 }
 0x60d   :  { %861 = vperm.xlu1 %1737, %v636_v56  }
 0x636   :  { %640 = vxpose.xlu1.b32.start [1/2] (short) (narrow) %v633_v54, 8 }
 0x63a   :  { %641 = vxpose.xlu1.b32.end [2/2] (short) (narrow) %v636_v56, 8 }
 0x658   :  { %1739 = vset.pattern.permute.xlu1 %v1834_v8 }
 0x67a   :  { %v675_v59 = vpop.permute.xlu1 %674 }
 0x67e   :  { %v680_v63 = vpop.permute.xlu0 %679 }
 0x67f   :  { %v765_v60 = vpop.permute.xlu1 %764 }
 0x683   :  { %v769_v61 = vpop.permute.xlu1 %768  ;;  %v858_v5 = vpop.permute.xlu0 %857 }
 0x688   :  { %v862_v62 = vpop.permute.xlu1 %861 }
 0x6b2   :  { %v656_v1 = vpop.trf.xlu1 }
 0x6b3   :  { %v685_v2 = vrot.slane %v656_v1, %v1962_v26  ;;  %v774_v3 = vrot.slane %v656_v1, %v1964_v27  ;;  %v867_v4 = vrot.slane %v656_v1, %v1966_v28 }
 0x6b5   :  { %v686_v6 = vadd.f32 %v685_v2, %v675_v59  ;;  %v775_v7 = vadd.f32 %v774_v3, %v765_v60  ;;  %v868_v10 = vadd.f32 %v867_v4, %v858_v5  ;;  %v869_v11 = vadd.f32 %v867_v4, %v862_v62 }
 0x6b6   :  { %v687_v16 = vadd.f32 %v685_v2, %v680_v63  ;;  %v776_v29 = vadd.f32 %v774_v3, %v769_v61 }
 0x6b7   :  { %vm688_vm3 = vcmp.gt.f32.partialorder %v686_v6, 0.0  ;;  %v690_v12 = vmul.f32 0.2, %v686_v6  ;;  %vm777_vm5 = vcmp.gt.f32.partialorder %v775_v7, 0.0  ;;  %v779_v14 = vmul.f32 0.2, %v775_v7 }
 0x6b8   :  { %vm871_vm6 = vcmp.gt.f32.partialorder %v869_v11, 0.0  ;;  %v873_v15 = vmul.f32 0.2, %v869_v11  ;;  %v872_v20 = vmul.f32 0.2, %v868_v10  ;;  %vm870_vm7 = vcmp.gt.f32.partialorder %v868_v10, 0.0 }
 0x6b9   :  { %v692_v17 = vsel %vm688_vm3, %v686_v6, %v690_v12  ;;  %v781_v19 = vsel %vm777_vm5, %v775_v7, %v779_v14  ;;  %v691_v31 = vmul.f32 0.2, %v687_v16  ;;  %vm689_vm8 = vcmp.gt.f32.partialorder %v687_v16, 0.0 }
 0x6ba   :  { %v875_v21 = vsel %vm871_vm6, %v869_v11, %v873_v15  ;;  %v694_v13 = vsel %vm1974_vm4, %v692_v17, -1e+30  ;;  %v783_v25 = vsel %vm1974_vm4, %v781_v19, -1e+30  ;;  %v874_v30 = vsel %vm870_vm7, %v868_v10, %v872_v20 }
 0x6bb   :  { %v877_v22 = vsel %vm1989_vm9, %v875_v21, -1e+30  ;;  %v696_v23 = vsel %vm71_vm1, %v694_v13, -inf  ;;  %v785_v32 = vsel %vm71_vm1, %v783_v25, -inf  ;;  %v876_v33 = vsel %vm1974_vm4, %v874_v30, -1e+30 }
 0x6bc   :  { %v881_v24 = vsel %vm71_vm1, %v877_v22, -inf  ;;  %697 = vmax.xlane.f32.xlu0 %v696_v23  ;;  %v693_v34 = vsel %vm689_vm8, %v687_v16, %v691_v31  ;;  %v780_v35 = vmul.f32 0.2, %v776_v29  ;;  %vm778_vm10 = vcmp.gt.f32.partialorder %v776_v29, 0.0 }
 0x6bd   :  { %882 = vmax.xlane.f32.xlu1 %v881_v24  ;;  %v878_v36 = vsel %vm71_vm1, %v876_v33, -inf  ;;  %v695_v37 = vsel %vm1989_vm9, %v693_v34, -1e+30 }
 0x6be   :  { %v782_v38 = vsel %vm778_vm10, %v776_v29, %v780_v35  ;;  %v699_v39 = vsel %vm71_vm1, %v695_v37, -inf }
 0x6bf   :  { %v784_v41 = vsel %vm1989_vm9, %v782_v38, -1e+30 }
 0x6c0   :  { %786 = vmax.xlane.f32.xlu0 %v785_v32  ;;  %v788_v42 = vsel %vm71_vm1, %v784_v41, -inf }
 0x6c4   :  { %879 = vmax.xlane.f32.xlu0 %v878_v36 }
 0x6c8   :  { %700 = vmax.xlane.f32.xlu0 %v699_v39 }
 0x6cc   :  { %789 = vmax.xlane.f32.xlu0 %v788_v42 }
 0x6e2   :  { %805 = vrot.lane.b32.xlu0 %v2046_v52, %s1841_s7 }
 0x6e6   :  { %897 = vrot.lane.b32.xlu0 %v2046_v52, %s1837_s1 }
 0x745   :  { %v698_v43 = vpop.xlane.xlu0 %697 }
 0x746   :  { %v702_v47 = vsub.f32 %v694_v13, %v698_v43  ;;  %v883_v51 = vpop.xlane.xlu1 %882 }
 0x747   :  { %v885_v56 = vsub.f32 %v877_v22, %v883_v51 }
 0x748   :  { %v704_v53 = vmul.f32 1.442695, %v702_v47  ;;  %v1751_v47 = vld [vmem:[%s2208_s9] sm:$0x3f]  }
 0x749   :  { %v787_v44 = vpop.xlane.xlu0 %786  ;;  %v888_v60 = vmul.f32 1.442695, %v885_v56 }
 0x74a   :  { %v791_v45 = vsub.f32 %v783_v25, %v787_v44 }
 0x74c   :  { %v793_v46 = vmul.f32 1.442695, %v791_v45 }
 0x74d   :  { %v880_v48 = vpop.xlane.xlu0 %879 }
 0x74e   :  { %1780 = vpow2.f32 %v793_v46  ;;  %v884_v49 = vsub.f32 %v876_v33, %v880_v48  ;;  %v1001_v48 = vsel %vm595_vm15, %v1751_v47, 0  ;;  %vm1049_vm15 = vcmask 1042432  }
 0x750   :  { %v886_v50 = vmul.f32 1.442695, %v884_v49 }
 0x751   :  { %v701_v54 = vpop.xlane.xlu0 %700 }
 0x752   :  { %1782 = vpow2.f32 %v886_v50  ;;  %v703_v55 = vsub.f32 %v695_v37, %v701_v54 }
 0x753   :  { %1784 = vpow2.f32 %v704_v53 }
 0x754   :  { %v706_v57 = vmul.f32 1.442695, %v703_v55  ;;  %v1557_v55 = vld [vmem:[%s2209_s8] ss:$0 sm:$0xff] }
 0x755   :  { %v790_v59 = vpop.xlane.xlu0 %789 }
 0x756   :  { %1786 = vpow2.f32 %v706_v57  ;;  %v792_v52 = vsub.f32 %v784_v41, %v790_v59 }
 0x758   :  { %v795_v61 = vmul.f32 1.442695, %v792_v52 }
 0x759   :  { %v806_v62 = vpop.permute.xlu0 %805 }
 0x75a   :  { %1788 = vpow2.f32 %v795_v61  ;;  %1663 = vmatpush3.bf16.msra.mxu0 %v806_v62 }
 0x75b   :  { %v1781_v63 = vpop.eup %1780  ;;  %1674 = vmatprep.subr.bf16.mxu0 %v1832_v0  ;;  %1790 = vpow2.f32 %v888_v60 }
 0x75c   :  { %v797_v1 = vsel %vm71_vm1, %v1781_v63, 0.0 }
 0x75d   :  { %798 = vadd.xlane.f32.xlu0 %v797_v1  ;;  %v898_v7 = vpop.permute.xlu0 %897 }
 0x75f   :  { %v1783_v2 = vpop.eup %1782 }
 0x760   :  { %v890_v3 = vsel %vm71_vm1, %v1783_v2, 0.0  ;;  %v1785_v4 = vpop.eup %1784 }
 0x761   :  { %891 = vadd.xlane.f32.xlu1 %v890_v3  ;;  %v708_v17 = vsel %vm71_vm1, %v1785_v4, 0.0 }
 0x763   :  { %v1787_v5 = vpop.eup %1786 }
 0x764   :  { %v714_v6 = vpack.c.bf16 %v1787_v5, %v1785_v4  ;;  %v711_v19 = vsel %vm71_vm1, %v1787_v5, 0.0 }
 0x766   :  { %1659 = vmatmul.mubr.msk.bf16.vlgmr.msra.gmra.mxu1 %vm71_vm1, %v714_v6 }
 0x767   :  { %v1789_v10 = vpop.eup %1788  ;;  %1669 = vmatpush3.bf16.msra.mxu1 %v898_v7  ;;  %1670 = vmatprep.mubr.msk.bf16.mxu1 %vm1833_vm0, %v1832_v0 }
 0x768   :  { %v800_v11 = vsel %vm71_vm1, %v1789_v10, 0.0  ;;  %v803_v12 = vpack.c.bf16 %v1789_v10, %v1781_v63  ;;  %1680 = vmatprep.subr.bf16.mxu1 %v1832_v0  ;;  %v1791_v14 = vpop.eup %1790 }
 0x769   :  { %801 = vadd.xlane.f32.xlu1 %v800_v11  ;;  %v893_v15 = vsel %vm71_vm1, %v1791_v14, 0.0  ;;  %v896_v16 = vpack.c.bf16 %v1791_v14, %v1783_v2 }
 0x76a   :  { %1665 = vmatmul.mubr.msk.bf16.vlgmr.msra.gmra.mxu0 %vm71_vm1, %v803_v12 }
 0x76b   :  { %1676 = vmatprep.mubr.msk.bf16.mxu0 %vm1833_vm0, %v1832_v0  ;;  %1675 = vmatpush3.bf16.msra.mxu0 %v1001_v48 }
 0x76c   :  { %1686 = vmatprep.subr.bf16.mxu0 %v1832_v0 }
 0x76d   :  { %894 = vadd.xlane.f32.xlu1 %v893_v15 }
 0x76e   :  { %1671 = vmatmul.mubr.msk.bf16.vlgmr.msra.gmra.mxu1 %vm71_vm1, %v896_v16  ;;  %v990_v16 = vld [vmem:[%s2210_s10] sm:$0x7]  ;;  %s1843_s10 = smov 126  }
 0x76f   :  { %1682 = vmatprep.mubr.msk.bf16.mxu1 %vm1833_vm0, %v1832_v0 }
 0x771   :  { %709 = vadd.xlane.f32.xlu1 %v708_v17  ;;  %v1051_v17 = vsel %vm1049_vm15, %v990_v16, 0 }
 0x772   :  { %1681 = vmatpush3.bf16.msra.mxu1 %v1051_v17 }
 0x773   :  { %1692 = vmatprep.subr.bf16.mxu1 %v1832_v0 }
 0x775   :  { %712 = vadd.xlane.f32.xlu1 %v711_v19 }
 0x7e6   :  { %v799_v21 = vpop.xlane.xlu0 %798 }
 0x7e7   :  { %1792 = vrcp.f32 %v799_v21 }
 0x7ea   :  { %v892_v20 = vpop.xlane.xlu1 %891 }
 0x7eb   :  { %1794 = vrcp.f32 %v892_v20 }
 0x7f2   :  { %v802_v13 = vpop.xlane.xlu1 %801 }
 0x7f3   :  { %1796 = vrcp.f32 %v802_v13 }
 0x7f4   :  { %v1793_v25 = vpop.eup %1792 }
 0x7f6   :  { %v895_v22 = vpop.xlane.xlu1 %894 }
 0x7f7   :  { %1798 = vrcp.f32 %v895_v22 }
 0x7f8   :  { %v1795_v34 = vpop.eup %1794 }
 0x7fa   :  { %v710_v49 = vpop.xlane.xlu1 %709 }
 0x7fb   :  { %1800 = vrcp.f32 %v710_v49 }
 0x7fe   :  { %v713_v50 = vpop.xlane.xlu1 %712 }
 0x7ff   :  { %1802 = vrcp.f32 %v713_v50 }
 0x800   :  { %v1797_v35 = vpop.eup %1796 }
 0x804   :  { %v1799_v43 = vpop.eup %1798 }
 0x808   :  { %v1801_v53 = vpop.eup %1800 }
 0x80c   :  { %v1803_v59 = vpop.eup %1802 }
 0x826   :  { %v752_v23 = vpop.f32.mrf.mxu1 }
 0x827   :  { %v760_v54 = vmul.f32 %v1801_v53, %v752_v23 }
 0x828   :  { %v1660_v24 = vpop.f32.mrf.mxu1 }
 0x82a   :  { %v755_v29 = vpop.f32.mrf.mxu1  ;;  %v845_v30 = vpop.f32.mrf.mxu0 }
 0x82b   :  { %v853_v31 = vmul.f32 %v1793_v25, %v845_v30  ;;  %v762_v61 = vmul.f32 %v1803_v59, %v755_v29 }
 0x82c   :  { %v1661_v32 = vpop.f32.mrf.mxu1  ;;  %v1666_v33 = vpop.f32.mrf.mxu0 }
 0x82d   :  { %950 = vrot.lane.b32.xlu1 %v853_v31, %s1842_s15 }
 0x82e   :  { %v848_v36 = vpop.f32.mrf.mxu0  ;;  %v937_v37 = vpop.f32.mrf.mxu1 }
 0x82f   :  { %v855_v38 = vmul.f32 %v1797_v35, %v848_v36  ;;  %v945_v39 = vmul.f32 %v1795_v34, %v937_v37 }
 0x830   :  { %v1667_v41 = vpop.f32.mrf.mxu0  ;;  %v1672_v42 = vpop.f32.mrf.mxu1 }
 0x831   :  { %958 = vrot.lane.b32.xlu1 %v945_v39, %s1839_s25  ;;  %952 = vrot.lane.b32.xlu0 %v855_v38, %s1842_s15 }
 0x832   :  { %v940_v44 = vpop.f32.mrf.mxu1 }
 0x833   :  { %v947_v45 = vmul.f32 %v1799_v43, %v940_v44 }
 0x834   :  { %v1673_v46 = vpop.f32.mrf.mxu1 }
 0x835   :  { %960 = vrot.lane.b32.xlu1 %v947_v45, %s1839_s25 }
 0x89f   :  { %v951_v51 = vpop.permute.xlu1 %950 }
 0x8a0   :  { %v965_v56 = vsel %vm964_vm11, %v760_v54, %v951_v51 }
 0x8a3   :  { %v959_v57 = vpop.permute.xlu1 %958  ;;  %v953_v60 = vpop.permute.xlu0 %952 }
 0x8a4   :  { %v967_v52 = vsel %vm499_vm12, %v965_v56, %v959_v57  ;;  %v966_v1 = vsel %vm964_vm11, %v762_v61, %v953_v60 }
 0x8a5   :  { %v975_v62 = vadd.f32 %v1557_v55, %v967_v52 }
 0x8a7   :  { %v979_v63 = vmul.f32 1.442695, %v975_v62  ;;  %v961_v2 = vpop.permute.xlu1 %960  ;;  %vm977_vm13 = vcmp.gt.f32.partialorder %v975_v62, 0.0 }
 0x8a8   :  { %v968_v3 = vsel %vm499_vm12, %v966_v1, %v961_v2  ;;  %vm1045_vm12 = vcmask 48128  }
 0x8a9   :  { %1804 = vpow2.f32 %v979_v63  ;;  %v976_v4 = vadd.f32 %v1557_v55, %v968_v3 }
 0x8ab   :  { %v981_v5 = vmul.f32 1.442695, %v976_v4  ;;  %vm978_vm14 = vcmp.gt.f32.partialorder %v976_v4, 0.0 }
 0x8ad   :  { %1806 = vpow2.f32 %v981_v5 }
 0x8b6   :  { %v1805_v6 = vpop.eup %1804 }
 0x8b7   :  { %v1558_v7 = vadd.f32 -1.0, %v1805_v6 }
 0x8b9   :  { %v985_v12 = vsel %vm977_vm13, %v975_v62, %v1558_v7 }
 0x8ba   :  { %v1807_v10 = vpop.eup %1806 }
 0x8bb   :  { %v1559_v11 = vadd.f32 -1.0, %v1807_v10 }
 0x8bd   :  { %v986_v14 = vsel %vm978_vm14, %v976_v4, %v1559_v11 }
 0x8be   :  { %v987_v15 = vpack.c.bf16 %v986_v14, %v985_v12 }
 0x8c0   :  { %1677 = vmatmul.mubr.msk.bf16.vlgmr.msra.gmra.mxu0 %vm591_vm2, %v987_v15 }
 0x8c1   :  { %1688 = vmatprep.mubr.msk.bf16.mxu0 %vm1833_vm0, %v1832_v0 }
 0x980   :  { %v1037_v19 = vpop.f32.mrf.mxu0 }
 0x982   :  { %v1678_v20 = vpop.f32.mrf.mxu0 }
 0x984   :  { %v1040_v21 = vpop.f32.mrf.mxu0 }
 0x985   :  { %v2125_v13 = vpack.c.bf16 %v1040_v21, %v1037_v19 }
 0x986   :  { %v1679_v22 = vpop.f32.mrf.mxu0 }
 0x987   :  { %1683 = vmatmul.mubr.msk.bf16.vlgmr.msra.gmra.mxu1 %vm1045_vm12, %v2125_v13  ;;  %1687 = vmatpush3.bf16.msra.mxu0 %v2125_v13 }
 0x988   :  { %1698 = vmatprep.subr.bf16.mxu0 %v1832_v0  ;;  %1694 = vmatprep.mubr.msk.bf16.mxu1 %vm1833_vm0, %v1832_v0 }
 0xa47   :  { %v1087_v23 = vpop.f32.mrf.mxu1 }
 0xa48   :  { %1218 = vperm.xlu1 %1739, %v1087_v23   ;;  %1128 = vperm.xlu0 %1738, %v1087_v23  }
 0xa49   :  { %v1684_v24 = vpop.f32.mrf.mxu1 }
 0xa4b   :  { %v1090_v25 = vpop.f32.mrf.mxu1 }
 0xa4c   :  { %1740 = vset.pattern.permute.xlu1 %v1836_v18  ;;  %1742 = vset.pattern.permute.xlu0 %v1834_v8 }
 0xa4d   :  { %1311 = vperm.xlu1 %1740, %v1087_v23   ;;  %1222 = vperm.xlu0 %1742, %v1090_v25   ;;  %v1685_v29 = vpop.f32.mrf.mxu1 }
 0xa51   :  { %1741 = vset.pattern.permute.xlu1 %v1835_v9 }
 0xa52   :  { %1133 = vperm.xlu1 %1741, %v1090_v25  }
 0xa56   :  { %1743 = vset.pattern.permute.xlu1 %v1836_v18 }
 0xa57   :  { %1315 = vperm.xlu1 %1743, %v1090_v25  }
 0xa6b   :  { %1094 = vxpose.xlu0.b32.start [1/2] (short) (narrow) %v1087_v23, 8 }
 0xa6f   :  { %1095 = vxpose.xlu0.b32.end [2/2] (short) (narrow) %v1090_v25, 8 }
 0xa98   :  { %1744 = vset.pattern.permute.xlu0 %v1836_v18 }
 0xac3   :  { %v1219_v30 = vpop.permute.xlu1 %1218  ;;  %v1129_v31 = vpop.permute.xlu0 %1128 }
 0xac8   :  { %v1312_v32 = vpop.permute.xlu1 %1311  ;;  %v1223_v33 = vpop.permute.xlu0 %1222 }
 0xacd   :  { %v1134_v9 = vpop.permute.xlu1 %1133 }
 0xad2   :  { %v1316_v56 = vpop.permute.xlu1 %1315 }
 0xae7   :  { %v1110_v34 = vpop.trf.xlu0 }
 0xae8   :  { %v1139_v8 = vrot.slane %v1110_v34, %v1962_v26  ;;  %v1228_v35 = vrot.slane %v1110_v34, %v1964_v27  ;;  %v1321_v36 = vrot.slane %v1110_v34, %v1966_v28 }
 0xaea   :  { %v1140_v37 = vadd.f32 %v1139_v8, %v1129_v31  ;;  %v1141_v38 = vadd.f32 %v1139_v8, %v1134_v9  ;;  %v1229_v39 = vadd.f32 %v1228_v35, %v1219_v30  ;;  %v1322_v41 = vadd.f32 %v1321_v36, %v1312_v32 }
 0xaeb   :  { %v1230_v55 = vadd.f32 %v1228_v35, %v1223_v33  ;;  %v1323_v57 = vadd.f32 %v1321_v36, %v1316_v56 }
 0xaec   :  { %vm1142_vm2 = vcmp.gt.f32.partialorder %v1140_v37, 0.0  ;;  %v1144_v42 = vmul.f32 0.2, %v1140_v37  ;;  %vm1143_vm3 = vcmp.gt.f32.partialorder %v1141_v38, 0.0  ;;  %v1145_v18 = vmul.f32 0.2, %v1141_v38 }
 0xaed   :  { %vm1231_vm5 = vcmp.gt.f32.partialorder %v1229_v39, 0.0  ;;  %v1233_v43 = vmul.f32 0.2, %v1229_v39  ;;  %v1326_v46 = vmul.f32 0.2, %v1322_v41  ;;  %vm1324_vm6 = vcmp.gt.f32.partialorder %v1322_v41, 0.0 }
 0xaee   :  { %v1146_v44 = vsel %vm1142_vm2, %v1140_v37, %v1144_v42  ;;  %v1147_v45 = vsel %vm1143_vm3, %v1141_v38, %v1145_v18  ;;  %v1234_v59 = vmul.f32 0.2, %v1230_v55  ;;  %vm1232_vm7 = vcmp.gt.f32.partialorder %v1230_v55, 0.0 }
 0xaef   :  { %v1148_v26 = vsel %vm1974_vm4, %v1146_v44, -1e+30  ;;  %v1149_v27 = vsel %vm1989_vm9, %v1147_v45, -1e+30  ;;  %v1235_v28 = vsel %vm1231_vm5, %v1229_v39, %v1233_v43  ;;  %v1328_v50 = vsel %vm1324_vm6, %v1322_v41, %v1326_v46 }
 0xaf0   :  { %v1150_v47 = vsel %vm71_vm1, %v1148_v26, -inf  ;;  %v1153_v48 = vsel %vm71_vm1, %v1149_v27, -inf  ;;  %v1237_v49 = vsel %vm1974_vm4, %v1235_v28, -1e+30  ;;  %v1330_v53 = vsel %vm1974_vm4, %v1328_v50, -1e+30 }
 0xaf1   :  { %1151 = vmax.xlane.f32.xlu1 %v1150_v47  ;;  %1154 = vmax.xlane.f32.xlu0 %v1153_v48  ;;  %v1239_v51 = vsel %vm71_vm1, %v1237_v49, -inf  ;;  %v1332_v54 = vsel %vm71_vm1, %v1330_v53, -inf  ;;  %v1236_v52 = vsel %vm1232_vm7, %v1230_v55, %v1234_v59  ;;  %v1327_v60 = vmul.f32 0.2, %v1323_v57 }
 0xaf2   :  { %vm1325_vm8 = vcmp.gt.f32.partialorder %v1323_v57, 0.0  ;;  %v1238_v61 = vsel %vm1989_vm9, %v1236_v52, -1e+30 }
 0xaf3   :  { %v1329_v62 = vsel %vm1325_vm8, %v1323_v57, %v1327_v60  ;;  %v1242_v40 = vsel %vm71_vm1, %v1238_v61, -inf }
 0xaf4   :  { %v1331_v63 = vsel %vm1989_vm9, %v1329_v62, -1e+30 }
 0xaf5   :  { %1240 = vmax.xlane.f32.xlu1 %v1239_v51  ;;  %v1335_v1 = vsel %vm71_vm1, %v1331_v63, -inf }
 0xaf9   :  { %1333 = vmax.xlane.f32.xlu1 %v1332_v54 }
 0xb0a   :  { %1259 = vrot.lane.b32.xlu1 %v2125_v13, %s1843_s10 }
 0xb2e   :  { %1243 = vmax.xlane.f32.xlu1 %v1242_v40 }
 0xb32   :  { %1336 = vmax.xlane.f32.xlu1 %v1335_v1 }
 0xb43   :  { %1351 = vrot.lane.b32.xlu1 %v2125_v13, %s1841_s7 }
 0xb7a   :  { %v1155_v2 = vpop.xlane.xlu0 %1154  ;;  %v1152_v3 = vpop.xlane.xlu1 %1151 }
 0xb7b   :  { %v1157_v4 = vsub.f32 %v1149_v27, %v1155_v2  ;;  %v1156_v5 = vsub.f32 %v1148_v26, %v1152_v3 }
 0xb7d   :  { %v1160_v6 = vmul.f32 1.442695, %v1157_v4  ;;  %v1158_v7 = vmul.f32 1.442695, %v1156_v5 }
 0xb7e   :  { %v1241_v10 = vpop.xlane.xlu1 %1240 }
 0xb7f   :  { %1808 = vpow2.f32 %v1160_v6  ;;  %v1245_v11 = vsub.f32 %v1237_v49, %v1241_v10 }
 0xb80   :  { %1810 = vpow2.f32 %v1158_v7  ;;  %v1566_v7 = vld [vmem:[%s2211_s11] ss:$0 sm:$0xff] }
 0xb81   :  { %v1247_v12 = vmul.f32 1.442695, %v1245_v11 }
 0xb82   :  { %v1334_v14 = vpop.xlane.xlu1 %1333 }
 0xb83   :  { %1812 = vpow2.f32 %v1247_v12  ;;  %v1338_v58 = vsub.f32 %v1330_v53, %v1334_v14 }
 0xb85   :  { %v1340_v15 = vmul.f32 1.442695, %v1338_v58 }
 0xb86   :  { %v1260_v16 = vpop.permute.xlu1 %1259 }
 0xb87   :  { %1814 = vpow2.f32 %v1340_v15  ;;  %1693 = vmatpush3.bf16.msra.mxu1 %v1260_v16 }
 0xb88   :  { %1704 = vmatprep.subr.bf16.mxu1 %v1832_v0 }
 0xb8c   :  { %v1809_v17 = vpop.eup %1808 }
 0xb8d   :  { %v1811_v19 = vpop.eup %1810  ;;  %v1165_v39 = vsel %vm71_vm1, %v1809_v17, 0.0 }
 0xb8e   :  { %v1168_v20 = vpack.c.bf16 %v1809_v17, %v1811_v19  ;;  %v1162_v38 = vsel %vm71_vm1, %v1811_v19, 0.0  ;;  %v1431_v17 = vld [vmem:[%s2212_s2] sm:$0x1] }
 0xb8f   :  { %v1478_v19 = vld [vmem:[%s2213_s12] sm:$0x7] }
 0xb90   :  { %v1813_v21 = vpop.eup %1812  ;;  %1689 = vmatmul.mubr.msk.bf16.vlgmr.msra.gmra.mxu0 %vm71_vm1, %v1168_v20  ;;  %v1490_v20 = vsel %vm1049_vm15, %v1478_v19, 0 }
 0xb91   :  { %v1251_v13 = vsel %vm71_vm1, %v1813_v21, 0.0  ;;  %1700 = vmatprep.mubr.msk.bf16.mxu0 %vm1833_vm0, %v1832_v0 }
 0xb92   :  { %1252 = vadd.xlane.f32.xlu1 %v1251_v13 }
 0xb94   :  { %v1815_v22 = vpop.eup %1814 }
 0xb95   :  { %v1344_v23 = vsel %vm71_vm1, %v1815_v22, 0.0 }
 0xb96   :  { %1345 = vadd.xlane.f32.xlu0 %v1344_v23 }
 0xbb7   :  { %v1244_v24 = vpop.xlane.xlu1 %1243 }
 0xbb8   :  { %v1246_v25 = vsub.f32 %v1238_v61, %v1244_v24 }
 0xbba   :  { %v1249_v29 = vmul.f32 1.442695, %v1246_v25 }
 0xbbb   :  { %v1337_v30 = vpop.xlane.xlu1 %1336 }
 0xbbc   :  { %1816 = vpow2.f32 %v1249_v29  ;;  %v1339_v31 = vsub.f32 %v1331_v63, %v1337_v30 }
 0xbbe   :  { %v1342_v32 = vmul.f32 1.442695, %v1339_v31 }
 0xbbf   :  { %v1352_v33 = vpop.permute.xlu1 %1351 }
 0xbc0   :  { %1818 = vpow2.f32 %v1342_v32  ;;  %1699 = vmatpush3.bf16.msra.mxu0 %v1352_v33 }
 0xbc1   :  { %1710 = vmatprep.subr.bf16.mxu0 %v1832_v0 }
 0xbc9   :  { %v1817_v34 = vpop.eup %1816 }
 0xbca   :  { %v1254_v8 = vsel %vm71_vm1, %v1817_v34, 0.0  ;;  %v1257_v35 = vpack.c.bf16 %v1817_v34, %v1813_v21  ;;  %v19_v21 = vstv %s2214_s13 }
 0xbcb   :  { %1255 = vadd.xlane.f32.xlu0 %v1254_v8  ;;  %20 = vst [vmem:[#allocation2] sm:$0x1] %v19_v21 }
 0xbcc   :  { %1695 = vmatmul.mubr.msk.bf16.vlgmr.msra.gmra.mxu1 %vm71_vm1, %v1257_v35 }
 0xbcd   :  { %v1819_v36 = vpop.eup %1818  ;;  %1706 = vmatprep.mubr.msk.bf16.mxu1 %vm1833_vm0, %v1832_v0 }
 0xbce   :  { %v1347_v9 = vsel %vm71_vm1, %v1819_v36, 0.0  ;;  %v1350_v37 = vpack.c.bf16 %v1819_v36, %v1815_v22 }
 0xbcf   :  { %1348 = vadd.xlane.f32.xlu0 %v1347_v9 }
 0xbd0   :  { %1701 = vmatmul.mubr.msk.bf16.vlgmr.msra.gmra.mxu0 %vm71_vm1, %v1350_v37 }
 0xbd1   :  { %1712 = vmatprep.mubr.msk.bf16.mxu0 %vm1833_vm0, %v1832_v0  ;;  %vm1418_vm0 = vcmask 15360   ;;  %1711 = vmatpush3.bf16.msra.mxu0 %v1490_v20 }
 0xbd2   :  { %v1568_v30 = vld [vmem:[#allocation2] ss:$0 sm:$0xff] }
 0xbd3   :  { %1163 = vadd.xlane.f32.xlu0 %v1162_v38 }
 0xbd7   :  { %1166 = vadd.xlane.f32.xlu0 %v1165_v39 }
 0xc1b   :  { %v1253_v45 = vpop.xlane.xlu1 %1252 }
 0xc1c   :  { %1820 = vrcp.f32 %v1253_v45 }
 0xc1f   :  { %v1346_v44 = vpop.xlane.xlu0 %1345 }
 0xc20   :  { %1822 = vrcp.f32 %v1346_v44 }
 0xc29   :  { %v1821_v27 = vpop.eup %1820 }
 0xc2d   :  { %v1823_v48 = vpop.eup %1822 }
 0xc50   :  { %v1206_v41 = vpop.f32.mrf.mxu0 }
 0xc52   :  { %v1690_v42 = vpop.f32.mrf.mxu0 }
 0xc54   :  { %v1209_v18 = vpop.f32.mrf.mxu0  ;;  %v1256_v46 = vpop.xlane.xlu0 %1255 }
 0xc55   :  { %1824 = vrcp.f32 %v1256_v46 }
 0xc56   :  { %v1691_v43 = vpop.f32.mrf.mxu0 }
 0xc58   :  { %v1349_v26 = vpop.xlane.xlu0 %1348 }
 0xc59   :  { %1826 = vrcp.f32 %v1349_v26 }
 0xc5c   :  { %v1164_v61 = vpop.xlane.xlu0 %1163 }
 0xc5d   :  { %1828 = vrcp.f32 %v1164_v61 }
 0xc60   :  { %v1167_v62 = vpop.xlane.xlu0 %1166 }
 0xc61   :  { %1830 = vrcp.f32 %v1167_v62 }
 0xc62   :  { %v1825_v49 = vpop.eup %1824 }
 0xc66   :  { %v1827_v57 = vpop.eup %1826 }
 0xc6a   :  { %v1829_v63 = vpop.eup %1828 }
 0xc6b   :  { %v1214_v2 = vmul.f32 %v1829_v63, %v1206_v41 }
 0xc6e   :  { %v1831_v1 = vpop.eup %1830 }
 0xc6f   :  { %v1216_v6 = vmul.f32 %v1831_v1, %v1209_v18 }
 0xc8c   :  { %v1299_v0 = vpop.f32.mrf.mxu1 }
 0xc8d   :  { %v1307_v28 = vmul.f32 %v1821_v27, %v1299_v0 }
 0xc8e   :  { %v1696_v47 = vpop.f32.mrf.mxu1 }
 0xc8f   :  { %1404 = vrot.lane.b32.xlu0 %v1307_v28, %s1844_s19 }
 0xc90   :  { %v1302_v50 = vpop.f32.mrf.mxu1  ;;  %v1391_v51 = vpop.f32.mrf.mxu0 }
 0xc91   :  { %v1309_v53 = vmul.f32 %v1825_v49, %v1302_v50  ;;  %v1399_v54 = vmul.f32 %v1823_v48, %v1391_v51 }
 0xc92   :  { %v1697_v55 = vpop.f32.mrf.mxu1  ;;  %v1702_v56 = vpop.f32.mrf.mxu0 }
 0xc93   :  { %1406 = vrot.lane.b32.xlu1 %v1309_v53, %s1844_s19  ;;  %1412 = vrot.lane.b32.xlu0 %v1399_v54, %s1842_s15 }
 0xc94   :  { %v1394_v59 = vpop.f32.mrf.mxu0 }
 0xc95   :  { %v1401_v52 = vmul.f32 %v1827_v57, %v1394_v59 }
 0xc96   :  { %v1703_v60 = vpop.f32.mrf.mxu0 }
 0xc97   :  { %1414 = vrot.lane.b32.xlu0 %v1401_v52, %s1842_s15 }
 0xd01   :  { %v1405_v40 = vpop.permute.xlu0 %1404 }
 0xd02   :  { %v1419_v5 = vsel %vm1418_vm0, %v1214_v2, %v1405_v40 }
 0xd05   :  { %v1413_v3 = vpop.permute.xlu0 %1412  ;;  %v1407_v4 = vpop.permute.xlu1 %1406 }
 0xd06   :  { %v1421_v10 = vsel %vm964_vm11, %v1419_v5, %v1413_v3  ;;  %v1420_v11 = vsel %vm1418_vm0, %v1216_v6, %v1407_v4 }
 0xd07   :  { %v1429_v58 = vadd.f32 %v1566_v7, %v1421_v10 }
 0xd09   :  { %v1415_v12 = vpop.permute.xlu0 %1414 }
 0xd0a   :  { %v1422_v14 = vsel %vm964_vm11, %v1420_v11, %v1415_v12 }
 0xd0b   :  { %v1430_v15 = vadd.f32 %v1566_v7, %v1422_v14 }
 0xd0d   :  { %v1432_v16 = vpack.c.bf16 %v1430_v15, %v1429_v58 }
 0xd0f   :  { %1705 = vmatpush3.bf16.msra.mxu1 %v1432_v16 }
 0xd12   :  { %1707 = vmatmul.mubr.msk.bf16.vlgmr.msra.gmra.mxu1 %vm71_vm1, %v1431_v17  ;;  %vm1532_vm1 = vcmask 1024  }
 0xdd2   :  { %v1470_v13 = vpop.f32.mrf.mxu1 }
 0xdd3   :  { %v1476_v22 = vmax.f32 %v1470_v13, 0.0 }
 0xdd4   :  { %v1708_v23 = vpop.f32.mrf.mxu1 }
 0xdd5   :  { %v1477_v24 = vpack.c.bf16 %v1476_v22, %v1476_v22 }
 0xdd6   :  { %v1473_v25 = vpop.f32.mrf.mxu1 }
 0xdd7   :  { %1713 = vmatmul.mubr.msk.bf16.vlgmr.msra.gmra.mxu0 %vm1045_vm12, %v1477_v24 }
 0xdd8   :  { %v1709_v29 = vpop.f32.mrf.mxu1 }
 0xe97   :  { %v1526_v31 = vpop.f32.mrf.mxu0 }
 0xe98   :  { %v1527_v32 = vadd.f32 %v1568_v30, %v1526_v31 }
 0xe99   :  { %v1714_v33 = vpop.f32.mrf.mxu0 }
 0xe9a   :  { %1533 = vst.msk [vmem:[%s2215_s14] sm:$0x3] %vm1532_vm1, %v1527_v32 }
 0xe9b   :  { %v1529_v34 = vpop.f32.mrf.mxu0 }
 0xe9d   :  { %v1715_v8 = vpop.f32.mrf.mxu0 }

</bundles_post_ra>
